<compile_context>
chip_gen: v7x
topology: tpu7x:2x2x1
jax: 0.10.0
libtpu: 0.0.40
codegen_flags: <defaults>
</compile_context>

<pallas_src>
import functools

import jax
import jax.numpy as jnp
from jax.experimental import pallas as pl
from jax.experimental.pallas import tpu as pltpu

HIDDEN = 128       # per-branch width
HIDDEN_FC = 256
LANE = 128


def _round_up(x, m):
    return (x + m - 1) // m * m


def _cfm_kernel(a_ref, s_ref, c_ref,
                wa_ref, ba_ref, ws_ref, bs_ref, wc_ref, bc_ref,
                w1a_ref, w1s_ref, w1c_ref, b1_ref,
                w2_ref, b2_ref, out_ref):
    bf16, f32 = jnp.bfloat16, jnp.float32

    # Branch Linears + ReLU. bf16 MXU operands, f32 accumulation; epilogue in f32.
    h_a = jnp.maximum(
        jnp.dot(a_ref[...].astype(bf16), wa_ref[...], preferred_element_type=f32)
        + ba_ref[...], 0.0)
    h_s = jnp.maximum(
        jnp.dot(s_ref[...].astype(bf16), ws_ref[...], preferred_element_type=f32)
        + bs_ref[...], 0.0)
    h_c = jnp.maximum(
        jnp.dot(c_ref[...].astype(bf16), wc_ref[...], preferred_element_type=f32)
        + bc_ref[...], 0.0)

    # fc[0]: Linear(384, 256) as a sum of three K=128 partial matmuls — the
    # (tb, 384) concat is never materialized. Column order of the original
    # torch.cat is [action | state | context], matching the W1 row blocks.
    h = jnp.dot(h_a.astype(bf16), w1a_ref[...], preferred_element_type=f32)
    h = h + jnp.dot(h_s.astype(bf16), w1s_ref[...], preferred_element_type=f32)
    h = h + jnp.dot(h_c.astype(bf16), w1c_ref[...], preferred_element_type=f32)
    h = jnp.maximum(h + b1_ref[...], 0.0)

    # fc[2]: Linear(256, state_dim), output columns zero-padded to lane width.
    out = jnp.dot(h.astype(bf16), w2_ref[...], preferred_element_type=f32) + b2_ref[...]
    out_ref[...] = out.astype(out_ref.dtype)


def prepare_params(params, state_dim, action_dim, context_dim):
    """One-time weight preprocessing (hoisted out of the forward path).

    `params` uses PyTorch nn.Linear conventions: weight (out, in), bias (out,).
    Weights are transposed and cast to bf16; biases stay f32 (added to the f32
    accumulator); the output layer is zero-padded to a lane-dense width.
    """
    wdt = jnp.bfloat16
    out_p = _round_up(state_dim, LANE)

    wa = params["wa"].T.astype(wdt)                       # (A, 128)
    ws = params["ws"].T.astype(wdt)                       # (S, 128)
    wc = params["wc"].T.astype(wdt)                       # (C, 128)
    ba = params["ba"].reshape(1, HIDDEN).astype(jnp.float32)
    bs = params["bs"].reshape(1, HIDDEN).astype(jnp.float32)
    bc = params["bc"].reshape(1, HIDDEN).astype(jnp.float32)

    # fc[0] weight, split into the three K=128 row blocks matching
    # torch.cat((action_h, state_h, context_h), dim=1).
    w1t = params["w1"].T.astype(wdt)                      # (384, 256)
    w1a = w1t[0:128]
    w1s = w1t[128:256]
    w1c = w1t[256:384]
    b1 = params["b1"].reshape(1, HIDDEN_FC).astype(jnp.float32)

    # fc[2] weight/bias zero-padded to a multiple of 128 output lanes.
    w2 = jnp.zeros((HIDDEN_FC, out_p), wdt).at[:, :state_dim].set(
        params["w2"].T.astype(wdt))
    b2 = jnp.zeros((1, out_p), jnp.float32).at[:, :state_dim].set(params["b2"])

    return dict(wa=wa, ba=ba, ws=ws, bs=bs, wc=wc, bc=bc,
                w1a=w1a, w1s=w1s, w1c=w1c, b1=b1, w2=w2, b2=b2)


@functools.partial(jax.jit,
                   static_argnames=("state_dim", "action_dim", "context_dim", "tb"))
def context_forward(state, action, context, prep, *,
                    state_dim, action_dim, context_dim, tb=512):
    """state (B,S), action (B,A), context (B,C) -> predicted state (B,S)."""
    B = state.shape[0]
    out_p = prep["w2"].shape[1]

    # Batch tile: multiple of 128 (MXU / layout friendly), capped by padded batch.
    b_ceil = _round_up(B, LANE)
    tb_eff = min(_round_up(tb, LANE), b_ceil)
    # Prefer >= 2 grid tiles so the "parallel" batch axis shards across both
    # TensorCores on v7x (no effect on single-TC v5e/v6e).
    if b_ceil // tb_eff < 2 and tb_eff % 256 == 0:
        tb_eff //= 2
    b_pad = _round_up(B, tb_eff)
    num_tiles = b_pad // tb_eff

    def pad_rows(x):
        x = x.astype(jnp.float32)
        return x if b_pad == B else jnp.pad(x, ((0, b_pad - B), (0, 0)))

    a = pad_rows(action)
    s = pad_rows(state)
    c = pad_rows(context)

    row = lambda i: (i, 0)    # activations / output: tiled over batch
    const = lambda i: (0, 0)  # weights / biases: resident across the grid

    out = pl.pallas_call(
        _cfm_kernel,
        out_shape=jax.ShapeDtypeStruct((b_pad, out_p), jnp.float32),
        grid=(num_tiles,),
        in_specs=[
            pl.BlockSpec((tb_eff, action_dim), row),
            pl.BlockSpec((tb_eff, state_dim), row),
            pl.BlockSpec((tb_eff, context_dim), row),
            pl.BlockSpec((action_dim, HIDDEN), const),
            pl.BlockSpec((1, HIDDEN), const),
            pl.BlockSpec((state_dim, HIDDEN), const),
            pl.BlockSpec((1, HIDDEN), const),
            pl.BlockSpec((context_dim, HIDDEN), const),
            pl.BlockSpec((1, HIDDEN), const),
            pl.BlockSpec((HIDDEN, HIDDEN_FC), const),
            pl.BlockSpec((HIDDEN, HIDDEN_FC), const),
            pl.BlockSpec((HIDDEN, HIDDEN_FC), const),
            pl.BlockSpec((1, HIDDEN_FC), const),
            pl.BlockSpec((HIDDEN_FC, out_p), const),
            pl.BlockSpec((1, out_p), const),
        ],
        out_specs=pl.BlockSpec((tb_eff, out_p), row),
        compiler_params=pltpu.CompilerParams(
            dimension_semantics=("parallel",)),
    )(a, s, c,
      prep["wa"], prep["ba"], prep["ws"], prep["bs"], prep["wc"], prep["bc"],
      prep["w1a"], prep["w1s"], prep["w1c"], prep["b1"], prep["w2"], prep["b2"])

    # Single fused slice: drop padded batch rows and padded output lanes together.
    return jax.lax.slice(out, (0, 0), (B, state_dim))


def init_params(key, state_dim, action_dim, context_dim):
    """Deterministic synthetic init (PyTorch nn.Linear shape conventions)."""
    ks = jax.random.split(key, 10)

    def lin(kw, kb, fan_in, fan_out):
        bound = 1.0 / jnp.sqrt(fan_in)
        w = jax.random.uniform(kw, (fan_out, fan_in), jnp.float32, -bound, bound)
        b = jax.random.uniform(kb, (fan_out,), jnp.float32, -bound, bound)
        return w, b

    ws, bs = lin(ks[0], ks[1], state_dim, HIDDEN)
    wa, ba = lin(ks[2], ks[3], action_dim, HIDDEN)
    wc, bc = lin(ks[4], ks[5], context_dim, HIDDEN)
    w1, b1 = lin(ks[6], ks[7], 3 * HIDDEN, HIDDEN_FC)
    w2, b2 = lin(ks[8], ks[9], HIDDEN_FC, state_dim)
    return dict(ws=ws, bs=bs, wa=wa, ba=ba, wc=wc, bc=bc, w1=w1, b1=b1, w2=w2, b2=b2)


def reference_forward(state, action, context, params):
    """Pure-JAX reference mirroring the PyTorch module exactly."""
    h_a = jnp.maximum(action @ params["wa"].T + params["ba"], 0.0)
    h_s = jnp.maximum(state @ params["ws"].T + params["bs"], 0.0)
    h_c = jnp.maximum(context @ params["wc"].T + params["bc"], 0.0)
    h = jnp.concatenate([h_a, h_s, h_c], axis=1)
    h = jnp.maximum(h @ params["w1"].T + params["b1"], 0.0)
    return h @ params["w2"].T + params["b2"]


if __name__ == "__main__":
    key = jax.random.PRNGKey(0)
    k_p, k_s, k_a, k_c = jax.random.split(key, 4)

    batch, state_dim, action_dim, context_dim = 16, 12, 6, 5
    params = init_params(k_p, state_dim, action_dim, context_dim)
    prep = prepare_params(params, state_dim, action_dim, context_dim)  # once, not per call

    state = jax.random.normal(k_s, (batch, state_dim), jnp.float32)
    action = jax.random.normal(k_a, (batch, action_dim), jnp.float32)
    context = jax.random.normal(k_c, (batch, context_dim), jnp.float32)

    out = context_forward(state, action, context, prep,
                          state_dim=state_dim, action_dim=action_dim,
                          context_dim=context_dim)
    out = jax.block_until_ready(out)

    ref = reference_forward(state, action, context, params)
    assert out.shape == (batch, state_dim)
    # Tolerance covers bf16 weight/activation quantization (f32 accumulation) vs
    # the f32 reference; a real bug would produce O(0.1+) errors.
    assert jnp.allclose(out, ref, atol=2e-2, rtol=2e-2), "mismatch vs reference"
    print("KERNEL_OK")
</pallas_src>

<mosaic_0001>
module attributes {stable_mosaic.version = 11 : i64} {
  func.func @_cfm_kernel(%arg0: i32, %arg1: memref<128x6xf32, #tpu.memory_space<vmem>>, %arg2: memref<128x12xf32, #tpu.memory_space<vmem>>, %arg3: memref<128x5xf32, #tpu.memory_space<vmem>>, %arg4: memref<6x128xbf16, #tpu.memory_space<vmem>>, %arg5: memref<1x128xf32, #tpu.memory_space<vmem>>, %arg6: memref<12x128xbf16, #tpu.memory_space<vmem>>, %arg7: memref<1x128xf32, #tpu.memory_space<vmem>>, %arg8: memref<5x128xbf16, #tpu.memory_space<vmem>>, %arg9: memref<1x128xf32, #tpu.memory_space<vmem>>, %arg10: memref<128x256xbf16, #tpu.memory_space<vmem>>, %arg11: memref<128x256xbf16, #tpu.memory_space<vmem>>, %arg12: memref<128x256xbf16, #tpu.memory_space<vmem>>, %arg13: memref<1x256xf32, #tpu.memory_space<vmem>>, %arg14: memref<256x128xbf16, #tpu.memory_space<vmem>>, %arg15: memref<1x128xf32, #tpu.memory_space<vmem>>, %arg16: memref<128x128xf32, #tpu.memory_space<vmem>>) attributes {dimension_semantics = [#tpu.dimension_semantics<parallel>], iteration_bounds = array<i64: 1>, scalar_prefetch = 0 : i64, scratch_operands = 0 : i64, tpu.core_type = #tpu.core_type<tc>, window_params = [{transform_indices = @transform_0, window_bounds = array<i64: 128, 6>}, {transform_indices = @transform_1, window_bounds = array<i64: 128, 12>}, {transform_indices = @transform_2, window_bounds = array<i64: 128, 5>}, {pipeline_mode = #tpu.pipeline_mode<synchronous>, transform_indices = @transform_3, window_bounds = array<i64: 6, 128>}, {pipeline_mode = #tpu.pipeline_mode<synchronous>, transform_indices = @transform_4, window_bounds = array<i64: 1, 128>}, {pipeline_mode = #tpu.pipeline_mode<synchronous>, transform_indices = @transform_5, window_bounds = array<i64: 12, 128>}, {pipeline_mode = #tpu.pipeline_mode<synchronous>, transform_indices = @transform_6, window_bounds = array<i64: 1, 128>}, {pipeline_mode = #tpu.pipeline_mode<synchronous>, transform_indices = @transform_7, window_bounds = array<i64: 5, 128>}, {pipeline_mode = #tpu.pipeline_mode<synchronous>, transform_indices = @transform_8, window_bounds = array<i64: 1, 128>}, {pipeline_mode = #tpu.pipeline_mode<synchronous>, transform_indices = @transform_9, window_bounds = array<i64: 128, 256>}, {pipeline_mode = #tpu.pipeline_mode<synchronous>, transform_indices = @transform_10, window_bounds = array<i64: 128, 256>}, {pipeline_mode = #tpu.pipeline_mode<synchronous>, transform_indices = @transform_11, window_bounds = array<i64: 128, 256>}, {pipeline_mode = #tpu.pipeline_mode<synchronous>, transform_indices = @transform_12, window_bounds = array<i64: 1, 256>}, {pipeline_mode = #tpu.pipeline_mode<synchronous>, transform_indices = @transform_13, window_bounds = array<i64: 256, 128>}, {pipeline_mode = #tpu.pipeline_mode<synchronous>, transform_indices = @transform_14, window_bounds = array<i64: 1, 128>}, {transform_indices = @transform_15, window_bounds = array<i64: 128, 128>}]} {
    %c0 = arith.constant 0 : index
    %c0_0 = arith.constant 0 : index
    %0 = vector.load %arg1[%c0, %c0_0] : memref<128x6xf32, #tpu.memory_space<vmem>>, vector<128x6xf32>
    %1 = arith.truncf %0 : vector<128x6xf32> to vector<128x6xbf16>
    %c0_1 = arith.constant 0 : index
    %c0_2 = arith.constant 0 : index
    %2 = vector.load %arg4[%c0_1, %c0_2] : memref<6x128xbf16, #tpu.memory_space<vmem>>, vector<6x128xbf16>
    %cst = arith.constant dense<0.000000e+00> : vector<128x128xf32>
    %3 = tpu.matmul %1, %2, %cst {dimension_numbers = #tpu.dot_dimension_numbers<[1], [0], [0], [1], [0, 0, 1, 1], [], []>} : vector<128x6xbf16>, vector<6x128xbf16>, vector<128x128xf32> -> vector<128x128xf32>
    %c0_3 = arith.constant 0 : index
    %c0_4 = arith.constant 0 : index
    %4 = vector.load %arg5[%c0_3, %c0_4] : memref<1x128xf32, #tpu.memory_space<vmem>>, vector<1x128xf32>
    %5 = vector.broadcast %4 : vector<1x128xf32> to vector<128x128xf32>
    %6 = arith.addf %3, %5 : vector<128x128xf32>
    %cst_5 = arith.constant 0.000000e+00 : f32
    %7 = vector.broadcast %cst_5 : f32 to vector<128x128xf32>
    %8 = arith.maximumf %6, %7 : vector<128x128xf32>
    %c0_6 = arith.constant 0 : index
    %c0_7 = arith.constant 0 : index
    %9 = vector.load %arg2[%c0_6, %c0_7] : memref<128x12xf32, #tpu.memory_space<vmem>>, vector<128x12xf32>
    %10 = arith.truncf %9 : vector<128x12xf32> to vector<128x12xbf16>
    %c0_8 = arith.constant 0 : index
    %c0_9 = arith.constant 0 : index
    %11 = vector.load %arg6[%c0_8, %c0_9] : memref<12x128xbf16, #tpu.memory_space<vmem>>, vector<12x128xbf16>
    %cst_10 = arith.constant dense<0.000000e+00> : vector<128x128xf32>
    %12 = tpu.matmul %10, %11, %cst_10 {dimension_numbers = #tpu.dot_dimension_numbers<[1], [0], [0], [1], [0, 0, 1, 1], [], []>} : vector<128x12xbf16>, vector<12x128xbf16>, vector<128x128xf32> -> vector<128x128xf32>
    %c0_11 = arith.constant 0 : index
    %c0_12 = arith.constant 0 : index
    %13 = vector.load %arg7[%c0_11, %c0_12] : memref<1x128xf32, #tpu.memory_space<vmem>>, vector<1x128xf32>
    %14 = vector.broadcast %13 : vector<1x128xf32> to vector<128x128xf32>
    %15 = arith.addf %12, %14 : vector<128x128xf32>
    %cst_13 = arith.constant 0.000000e+00 : f32
    %16 = vector.broadcast %cst_13 : f32 to vector<128x128xf32>
    %17 = arith.maximumf %15, %16 : vector<128x128xf32>
    %c0_14 = arith.constant 0 : index
    %c0_15 = arith.constant 0 : index
    %18 = vector.load %arg3[%c0_14, %c0_15] : memref<128x5xf32, #tpu.memory_space<vmem>>, vector<128x5xf32>
    %19 = arith.truncf %18 : vector<128x5xf32> to vector<128x5xbf16>
    %c0_16 = arith.constant 0 : index
    %c0_17 = arith.constant 0 : index
    %20 = vector.load %arg8[%c0_16, %c0_17] : memref<5x128xbf16, #tpu.memory_space<vmem>>, vector<5x128xbf16>
    %cst_18 = arith.constant dense<0.000000e+00> : vector<128x128xf32>
    %21 = tpu.matmul %19, %20, %cst_18 {dimension_numbers = #tpu.dot_dimension_numbers<[1], [0], [0], [1], [0, 0, 1, 1], [], []>} : vector<128x5xbf16>, vector<5x128xbf16>, vector<128x128xf32> -> vector<128x128xf32>
    %c0_19 = arith.constant 0 : index
    %c0_20 = arith.constant 0 : index
    %22 = vector.load %arg9[%c0_19, %c0_20] : memref<1x128xf32, #tpu.memory_space<vmem>>, vector<1x128xf32>
    %23 = vector.broadcast %22 : vector<1x128xf32> to vector<128x128xf32>
    %24 = arith.addf %21, %23 : vector<128x128xf32>
    %cst_21 = arith.constant 0.000000e+00 : f32
    %25 = vector.broadcast %cst_21 : f32 to vector<128x128xf32>
    %26 = arith.maximumf %24, %25 : vector<128x128xf32>
    %27 = arith.truncf %8 : vector<128x128xf32> to vector<128x128xbf16>
    %c0_22 = arith.constant 0 : index
    %c0_23 = arith.constant 0 : index
    %28 = vector.load %arg10[%c0_22, %c0_23] : memref<128x256xbf16, #tpu.memory_space<vmem>>, vector<128x256xbf16>
    %cst_24 = arith.constant dense<0.000000e+00> : vector<128x256xf32>
    %29 = tpu.matmul %27, %28, %cst_24 {dimension_numbers = #tpu.dot_dimension_numbers<[1], [0], [0], [1], [0, 0, 1, 1], [], []>} : vector<128x128xbf16>, vector<128x256xbf16>, vector<128x256xf32> -> vector<128x256xf32>
    %30 = arith.truncf %17 : vector<128x128xf32> to vector<128x128xbf16>
    %c0_25 = arith.constant 0 : index
    %c0_26 = arith.constant 0 : index
    %31 = vector.load %arg11[%c0_25, %c0_26] : memref<128x256xbf16, #tpu.memory_space<vmem>>, vector<128x256xbf16>
    %cst_27 = arith.constant dense<0.000000e+00> : vector<128x256xf32>
    %32 = tpu.matmul %30, %31, %cst_27 {dimension_numbers = #tpu.dot_dimension_numbers<[1], [0], [0], [1], [0, 0, 1, 1], [], []>} : vector<128x128xbf16>, vector<128x256xbf16>, vector<128x256xf32> -> vector<128x256xf32>
    %33 = arith.addf %29, %32 : vector<128x256xf32>
    %34 = arith.truncf %26 : vector<128x128xf32> to vector<128x128xbf16>
    %c0_28 = arith.constant 0 : index
    %c0_29 = arith.constant 0 : index
    %35 = vector.load %arg12[%c0_28, %c0_29] : memref<128x256xbf16, #tpu.memory_space<vmem>>, vector<128x256xbf16>
    %cst_30 = arith.constant dense<0.000000e+00> : vector<128x256xf32>
    %36 = tpu.matmul %34, %35, %cst_30 {dimension_numbers = #tpu.dot_dimension_numbers<[1], [0], [0], [1], [0, 0, 1, 1], [], []>} : vector<128x128xbf16>, vector<128x256xbf16>, vector<128x256xf32> -> vector<128x256xf32>
    %37 = arith.addf %33, %36 : vector<128x256xf32>
    %c0_31 = arith.constant 0 : index
    %c0_32 = arith.constant 0 : index
    %38 = vector.load %arg13[%c0_31, %c0_32] : memref<1x256xf32, #tpu.memory_space<vmem>>, vector<1x256xf32>
    %39 = vector.broadcast %38 : vector<1x256xf32> to vector<128x256xf32>
    %40 = arith.addf %37, %39 : vector<128x256xf32>
    %cst_33 = arith.constant 0.000000e+00 : f32
    %41 = vector.broadcast %cst_33 : f32 to vector<128x256xf32>
    %42 = arith.maximumf %40, %41 : vector<128x256xf32>
    %43 = arith.truncf %42 : vector<128x256xf32> to vector<128x256xbf16>
    %c0_34 = arith.constant 0 : index
    %c0_35 = arith.constant 0 : index
    %44 = vector.load %arg14[%c0_34, %c0_35] : memref<256x128xbf16, #tpu.memory_space<vmem>>, vector<256x128xbf16>
    %cst_36 = arith.constant dense<0.000000e+00> : vector<128x128xf32>
    %45 = tpu.matmul %43, %44, %cst_36 {dimension_numbers = #tpu.dot_dimension_numbers<[1], [0], [0], [1], [0, 0, 1, 1], [], []>} : vector<128x256xbf16>, vector<256x128xbf16>, vector<128x128xf32> -> vector<128x128xf32>
    %c0_37 = arith.constant 0 : index
    %c0_38 = arith.constant 0 : index
    %46 = vector.load %arg15[%c0_37, %c0_38] : memref<1x128xf32, #tpu.memory_space<vmem>>, vector<1x128xf32>
    %47 = vector.broadcast %46 : vector<1x128xf32> to vector<128x128xf32>
    %48 = arith.addf %45, %47 : vector<128x128xf32>
    %c0_39 = arith.constant 0 : index
    %c0_40 = arith.constant 0 : index
    %49 = vector.load %arg16[%c0_39, %c0_40] : memref<128x128xf32, #tpu.memory_space<vmem>>, vector<128x128xf32>
    tpu.vector_store %arg16[%c0_39, %c0_40], %48 {strides = array<i32>} : memref<128x128xf32, #tpu.memory_space<vmem>>, vector<128x128xf32>,
    return
  }
  func.func @transform_0(%arg0: i32) -> (i32, i32) {
    %c0_i32 = arith.constant 0 : i32
    %c0_i32_0 = arith.constant 0 : i32
    return %arg0, %c0_i32 : i32, i32
  }
  func.func @transform_1(%arg0: i32) -> (i32, i32) {
    %c0_i32 = arith.constant 0 : i32
    %c0_i32_0 = arith.constant 0 : i32
    return %arg0, %c0_i32 : i32, i32
  }
  func.func @transform_2(%arg0: i32) -> (i32, i32) {
    %c0_i32 = arith.constant 0 : i32
    %c0_i32_0 = arith.constant 0 : i32
    return %arg0, %c0_i32 : i32, i32
  }
  func.func @transform_3(%arg0: i32) -> (i32, i32) {
    %c0_i32 = arith.constant 0 : i32
    %c0_i32_0 = arith.constant 0 : i32
    %c0_i32_1 = arith.constant 0 : i32
    return %c0_i32, %c0_i32_0 : i32, i32
  }
  func.func @transform_4(%arg0: i32) -> (i32, i32) {
    %c0_i32 = arith.constant 0 : i32
    %c0_i32_0 = arith.constant 0 : i32
    %c0_i32_1 = arith.constant 0 : i32
    return %c0_i32, %c0_i32_0 : i32, i32
  }
  func.func @transform_5(%arg0: i32) -> (i32, i32) {
    %c0_i32 = arith.constant 0 : i32
    %c0_i32_0 = arith.constant 0 : i32
    %c0_i32_1 = arith.constant 0 : i32
    return %c0_i32, %c0_i32_0 : i32, i32
  }
  func.func @transform_6(%arg0: i32) -> (i32, i32) {
    %c0_i32 = arith.constant 0 : i32
    %c0_i32_0 = arith.constant 0 : i32
    %c0_i32_1 = arith.constant 0 : i32
    return %c0_i32, %c0_i32_0 : i32, i32
  }
  func.func @transform_7(%arg0: i32) -> (i32, i32) {
    %c0_i32 = arith.constant 0 : i32
    %c0_i32_0 = arith.constant 0 : i32
    %c0_i32_1 = arith.constant 0 : i32
    return %c0_i32, %c0_i32_0 : i32, i32
  }
  func.func @transform_8(%arg0: i32) -> (i32, i32) {
    %c0_i32 = arith.constant 0 : i32
    %c0_i32_0 = arith.constant 0 : i32
    %c0_i32_1 = arith.constant 0 : i32
    return %c0_i32, %c0_i32_0 : i32, i32
  }
  func.func @transform_9(%arg0: i32) -> (i32, i32) {
    %c0_i32 = arith.constant 0 : i32
    %c0_i32_0 = arith.constant 0 : i32
    %c0_i32_1 = arith.constant 0 : i32
    return %c0_i32, %c0_i32_0 : i32, i32
  }
  func.func @transform_10(%arg0: i32) -> (i32, i32) {
    %c0_i32 = arith.constant 0 : i32
    %c0_i32_0 = arith.constant 0 : i32
    %c0_i32_1 = arith.constant 0 : i32
    return %c0_i32, %c0_i32_0 : i32, i32
  }
  func.func @transform_11(%arg0: i32) -> (i32, i32) {
    %c0_i32 = arith.constant 0 : i32
    %c0_i32_0 = arith.constant 0 : i32
    %c0_i32_1 = arith.constant 0 : i32
    return %c0_i32, %c0_i32_0 : i32, i32
  }
  func.func @transform_12(%arg0: i32) -> (i32, i32) {
    %c0_i32 = arith.constant 0 : i32
    %c0_i32_0 = arith.constant 0 : i32
    %c0_i32_1 = arith.constant 0 : i32
    return %c0_i32, %c0_i32_0 : i32, i32
  }
  func.func @transform_13(%arg0: i32) -> (i32, i32) {
    %c0_i32 = arith.constant 0 : i32
    %c0_i32_0 = arith.constant 0 : i32
    %c0_i32_1 = arith.constant 0 : i32
    return %c0_i32, %c0_i32_0 : i32, i32
  }
  func.func @transform_14(%arg0: i32) -> (i32, i32) {
    %c0_i32 = arith.constant 0 : i32
    %c0_i32_0 = arith.constant 0 : i32
    %c0_i32_1 = arith.constant 0 : i32
    return %c0_i32, %c0_i32_0 : i32, i32
  }
  func.func @transform_15(%arg0: i32) -> (i32, i32) {
    %c0_i32 = arith.constant 0 : i32
    %c0_i32_0 = arith.constant 0 : i32
    return %arg0, %c0_i32 : i32, i32
  }
}

</mosaic_0001>

<bundles_post_ra>
// kernel: context_forward.1
= control target key start
LH: loop header
LB: loop body
LE: loop exit
PB: predicated region body
PF: predicated region fallthrough
CT: control target
= control target key end

     0   :  { %20 = vsyncpa [#allocation3], 0  ;;  %s3045_s0 = inlined_call_operand.vmem [shape: f32[128,6], index: 0, kind: input, shape index: {}]   ;;  %s3046_s1 = inlined_call_operand.vmem [shape: f32[128,12], index: 1, kind: input, shape index: {}]   ;;  %s3047_s2 = inlined_call_operand.vmem [shape: f32[128,5], index: 2, kind: input, shape index: {}]   ;;  %s3048_s3 = inlined_call_operand.vmem [shape: bf16[6,128], index: 3, kind: input, shape index: {}]   ;;  %s3049_s4 = inlined_call_operand.hbm [shape: f32[1,128], index: 4, kind: input, shape index: {}]   ;;  %s3050_s5 = inlined_call_operand.vmem [shape: bf16[12,128], index: 5, kind: input, shape index: {}]   ;;  %s3051_s6 = inlined_call_operand.hbm [shape: f32[1,128], index: 6, kind: input, shape index: {}]   ;;  %s3052_s7 = inlined_call_operand.vmem [shape: bf16[5,128], index: 7, kind: input, shape index: {}]   ;;  %s3053_s8 = inlined_call_operand.hbm [shape: f32[1,128], index: 8, kind: input, shape index: {}]   ;;  %s3054_s9 = inlined_call_operand.vmem [shape: bf16[128,256], index: 9, kind: input, shape index: {}]   ;;  %s3055_s10 = inlined_call_operand.vmem [shape: bf16[128,256], index: 10, kind: input, shape index: {}]   ;;  %s3056_s11 = inlined_call_operand.vmem [shape: bf16[128,256], index: 11, kind: input, shape index: {}]   ;;  %s3057_s12 = inlined_call_operand.hbm [shape: f32[1,256], index: 12, kind: input, shape index: {}]   ;;  %s3058_s13 = inlined_call_operand.vmem [shape: bf16[256,128], index: 13, kind: input, shape index: {}]   ;;  %s3059_s14 = inlined_call_operand.hbm [shape: f32[1,128], index: 14, kind: input, shape index: {}]   ;;  %s3060_s15 = inlined_call_operand.vmem [shape: f32[128,128], index: 15, kind: output, shape index: {}]  }
   0x1   :  { %21 = vsyncpa [#allocation5], 0 }
   0x2   :  { %22 = vsyncpa [#allocation8], 0  ;;  %s2201_s18 = smov [#allocation4]   ;;  %s2202_s20 = smov [#allocation7]  }
   0x3   :  { %s49_s19 = sshll.u32 %s2201_s18, 4  ;;  %s77_s21 = sshll.u32 %s2202_s20, 4  ;;  %s50_s19 = int_to_ptr.vmem [resolvable:$true] %s49_s19  ;;  %s78_s21 = int_to_ptr.vmem [resolvable:$true] %s77_s21 }
   0x4   :  { %s2085_s24 = scalar_lea.hbm %s3051_s6, 16 }
   0x5   :  { %p2086_p0 = scmp.ne.s32.totalorder %s3051_s6, %s2085_s24  ;;  %p2089_p1 = scmp.lt.u32.totalorder %s2085_s24, %s3051_s6 }
   0x7   :  { %p2091_p2 = pnand %p2089_p1, %p2086_p0 }
   0x9   :  { %2094 = shalt.err (!%p2091_p2)
}
   0xa   :  { %s2095_s29 = scalar_lea.vmem %s50_s19, 16  ;;  %s2099_s30 = scalar_lea.vmem %s50_s19, 32 }
   0xb   :  { %p2096_p3 = scmp.ne.s32.totalorder %s50_s19, %s2095_s29  ;;  %p2100_p4 = scmp.lt.s32.totalorder %s50_s19, %s50_s19 }
   0xc   :  { %p2101_p5 = scmp.lt.s32.totalorder %s2099_s30, %s2095_s29 }
   0xe   :  { %p2102_p6 = por %p2101_p5, %p2100_p4 }
  0x10   :  { %p2103_p7 = pnand %p2102_p6, %p2096_p3 }
  0x12   :  { %2106 = shalt.err (!%p2103_p7)
}
  0x13   :  { %52 = dma.hbm_to_vmem [thread:$0]  %s3051_s6, 16, %s50_s19, [#allocation5]  }
  0x14   :  { %s2107_s22 = scalar_lea.hbm %s3057_s12, 32 }
  0x15   :  { %p2108_p8 = scmp.ne.s32.totalorder %s3057_s12, %s2107_s22  ;;  %p2111_p9 = scmp.lt.u32.totalorder %s2107_s22, %s3057_s12 }
  0x17   :  { %p2113_p10 = pnand %p2111_p9, %p2108_p8 }
  0x19   :  { %2116 = shalt.err (!%p2113_p10)
}
  0x1a   :  { %s2117_s27 = scalar_lea.vmem %s78_s21, 32  ;;  %p2122_p12 = scmp.lt.s32.totalorder %s78_s21, %s78_s21 }
  0x1b   :  { %p2118_p11 = scmp.ne.s32.totalorder %s78_s21, %s2117_s27  ;;  %p2123_p13 = scmp.lt.s32.totalorder %s2117_s27, %s2117_s27 }
  0x1d   :  { %p2124_p0 = por %p2123_p13, %p2122_p12 }
  0x1f   :  { %p2125_p1 = pnand %p2124_p0, %p2118_p11 }
  0x21   :  { %2128 = shalt.err (!%p2125_p1)
}
  0x22   :  { %80 = dma.hbm_to_vmem [thread:$0]  %s3057_s12, 32, %s78_s21, [#allocation8]  }
  0x23   :  { %s2203_s28 = smov [#allocation2]   ;;  %s2204_s30 = smov [#allocation6]  }
  0x24   :  { %s37_s29 = sshll.u32 %s2203_s28, 4  ;;  %s61_s16 = sshll.u32 %s2204_s30, 4  ;;  %s38_s29 = int_to_ptr.vmem [resolvable:$true] %s37_s29  ;;  %s62_s16 = int_to_ptr.vmem [resolvable:$true] %s61_s16 }
  0x25   :  { %s2129_s20 = scalar_lea.hbm %s3049_s4, 16 }
  0x26   :  { %p2130_p2 = scmp.ne.s32.totalorder %s3049_s4, %s2129_s20  ;;  %p2133_p3 = scmp.lt.u32.totalorder %s2129_s20, %s3049_s4 }
  0x28   :  { %p2135_p4 = pnand %p2133_p3, %p2130_p2 }
  0x2a   :  { %2138 = shalt.err (!%p2135_p4)
}
  0x2b   :  { %s2139_s12 = scalar_lea.vmem %s38_s29, 16  ;;  %s2143_s21 = scalar_lea.vmem %s38_s29, 32 }
  0x2c   :  { %p2140_p5 = scmp.ne.s32.totalorder %s38_s29, %s2139_s12  ;;  %p2144_p6 = scmp.lt.s32.totalorder %s38_s29, %s38_s29 }
  0x2d   :  { %p2145_p7 = scmp.lt.s32.totalorder %s2143_s21, %s2139_s12 }
  0x2f   :  { %p2146_p8 = por %p2145_p7, %p2144_p6 }
  0x31   :  { %p2147_p9 = pnand %p2146_p8, %p2140_p5 }
  0x33   :  { %2150 = shalt.err (!%p2147_p9)
}
  0x34   :  { %40 = dma.hbm_to_vmem [thread:$0]  %s3049_s4, 16, %s38_s29, [#allocation3]  }
  0x35   :  { %s2151_s28 = scalar_lea.hbm %s3053_s8, 16 }
  0x36   :  { %p2152_p10 = scmp.ne.s32.totalorder %s3053_s8, %s2151_s28  ;;  %p2155_p11 = scmp.lt.u32.totalorder %s2151_s28, %s3053_s8 }
  0x38   :  { %p2157_p12 = pnand %p2155_p11, %p2152_p10 }
  0x3a   :  { %2160 = shalt.err (!%p2157_p12)
}
  0x3b   :  { %s2161_s22 = scalar_lea.vmem %s62_s16, 16  ;;  %s2165_s23 = scalar_lea.vmem %s62_s16, 32 }
  0x3c   :  { %p2162_p13 = scmp.ne.s32.totalorder %s62_s16, %s2161_s22  ;;  %p2166_p0 = scmp.lt.s32.totalorder %s62_s16, %s62_s16 }
  0x3d   :  { %p2167_p1 = scmp.lt.s32.totalorder %s2165_s23, %s2161_s22 }
  0x3f   :  { %p2168_p2 = por %p2167_p1, %p2166_p0 }
  0x41   :  { %p2169_p3 = pnand %p2168_p2, %p2162_p13 }
  0x43   :  { %2172 = shalt.err (!%p2169_p3)
}
  0x44   :  { %64 = dma.hbm_to_vmem [thread:$0]  %s3053_s8, 16, %s62_s16, [#allocation5]  }
  0x45   :  { %s2205_s24 = smov [#allocation9]   ;;  %s2173_s26 = scalar_lea.hbm %s3059_s14, 16 }
  0x46   :  { %s89_s25 = sshll.u32 %s2205_s24, 4  ;;  %p2174_p4 = scmp.ne.s32.totalorder %s3059_s14, %s2173_s26  ;;  %s90_s25 = int_to_ptr.vmem [resolvable:$true] %s89_s25 }
  0x47   :  { %p2177_p5 = scmp.lt.u32.totalorder %s2173_s26, %s3059_s14 }
  0x49   :  { %p2179_p6 = pnand %p2177_p5, %p2174_p4 }
  0x4b   :  { %2182 = shalt.err (!%p2179_p6)
}
  0x4c   :  { %s2183_s30 = scalar_lea.vmem %s90_s25, 16  ;;  %s2187_s8 = scalar_lea.vmem %s90_s25, 32 }
  0x4d   :  { %p2184_p7 = scmp.ne.s32.totalorder %s90_s25, %s2183_s30  ;;  %p2188_p8 = scmp.lt.s32.totalorder %s90_s25, %s90_s25 }
  0x4e   :  { %p2189_p9 = scmp.lt.s32.totalorder %s2187_s8, %s2183_s30 }
  0x50   :  { %p2190_p10 = por %p2189_p9, %p2188_p8 }
  0x52   :  { %p2191_p11 = pnand %p2190_p10, %p2184_p7 }
  0x54   :  { %2194 = shalt.err (!%p2191_p11)
}
  0x55   :  { %92 = dma.hbm_to_vmem [thread:$0]  %s3059_s14, 16, %s90_s25, [#allocation8]  }
  0x56   :  { %2195 = dma.done.wait [#allocation3], 16  }
  0x57   :  { %2196 = vsyncadd [#allocation3], 4294967280 }
  0x58   :  { %2197 = dma.done.wait [#allocation5], 32  }
  0x59   :  { %2198 = vsyncadd [#allocation5], 4294967264 }
  0x5a   :  { %2199 = dma.done.wait [#allocation8], 48  }
  0x5b   :  { %2200 = vsyncadd [#allocation8], 4294967248  ;;  %vm346_vm0 = vcmask 1045504   ;;  %vm321_vm1 = vcmask 97280   ;;  %v1996_v0 = vld [vmem:[%s3050_s5] sm:$0x3f]  }
  0x5c   :  { %v283_v1 = vld [vmem:[%s3046_s1] sm:$0xff]  ;;  %v284_v2 = vld [vmem:[%s3046_s1 + $0x8] sm:$0xff]  ;;  %v285_v3 = vld [vmem:[%s3046_s1 + $0x10] sm:$0xff]  ;;  %vm166_vm2 = vcmask 1042432   ;;  %vm520_vm3 = vcmask 1041408   ;;  %1988 = vmatprep.subr.msk.bf16.mxu1 %vm346_vm0, %v1996_v0  ;;  %v348_v4 = vsel %vm346_vm0, %v1996_v0, 0 }
  0x5d   :  { %v299_v5 = vpack.c.bf16 %v284_v2, %v283_v1  ;;  %v286_v6 = vld [vmem:[%s3046_s1 + $0x18] sm:$0xff]  ;;  %v287_v7 = vld [vmem:[%s3046_s1 + $0x20] sm:$0xff]  ;;  %v288_v8 = vld [vmem:[%s3046_s1 + $0x28] sm:$0xff]  ;;  %1872 = vmatpush3.bf16.msra.mxu1 %v348_v4  ;;  %v2206_v12 = vmov 65535   ;;  %vm141_vm4 = vcmask 48128   ;;  %vm495_vm5 = vcmask 39936  }
  0x5e   :  { %v300_v9 = vpack.c.bf16 %v286_v6, %v285_v3  ;;  %v301_v10 = vpack.c.bf16 %v288_v8, %v287_v7  ;;  %v133_v11 = vld [vmem:[%s3048_s3] sm:$0x7]  ;;  %v521_v13 = vsel %vm520_vm3, 4294967295, %v2206_v12  ;;  %v110_v16 = vld [vmem:[%s3045_s0 + $0x8] sm:$0xff]  ;;  %v111_v18 = vld [vmem:[%s3045_s0 + $0x10] sm:$0xff] }
  0x5f   :  { %1873 = vmatprep.mubr.msk.bf16.mxu1 %vm321_vm1, %v299_v5  ;;  %1987 = vmatprep.subr.msk.bf16.mxu0 %vm166_vm2, %v133_v11  ;;  %v168_v14 = vsel %vm166_vm2, %v133_v11, 0  ;;  %v109_v15 = vld [vmem:[%s3045_s0] sm:$0xff]  ;;  %v112_v19 = vld [vmem:[%s3045_s0 + $0x18] sm:$0xff]  ;;  %v289_v21 = vld [vmem:[%s3046_s1 + $0x30] sm:$0xff]  ;;  %v522_v23 = vsel %vm166_vm2, %v521_v13, 0 }
  0x60   :  { %1854 = vmatpush3.bf16.msra.mxu0 %v168_v14  ;;  %1874 = vmatmul.mubr.msk.bf16.vlgmr.msra.gmra.mrb[0].mxu1 %vm321_vm1, %v300_v9  ;;  %v125_v17 = vpack.c.bf16 %v110_v16, %v109_v15  ;;  %v113_v20 = vld [vmem:[%s3045_s0 + $0x20] sm:$0xff]  ;;  %v290_v22 = vld [vmem:[%s3046_s1 + $0x38] sm:$0xff]  ;;  %v126_v24 = vpack.c.bf16 %v112_v19, %v111_v18  ;;  %v114_v25 = vld [vmem:[%s3045_s0 + $0x28] sm:$0xff] }
  0x61   :  { %1877 = vmatprep.mubr.msk.bf16.mxu1 %vm321_vm1, %v301_v10  ;;  %v291_v26 = vld [vmem:[%s3046_s1 + $0x40] sm:$0xff]  ;;  %v292_v27 = vld [vmem:[%s3046_s1 + $0x48] sm:$0xff]  ;;  %v127_v28 = vpack.c.bf16 %v114_v25, %v113_v20  ;;  %v302_v30 = vpack.c.bf16 %v290_v22, %v289_v21  ;;  %v115_v31 = vld [vmem:[%s3045_s0 + $0x30] sm:$0xff] }
  0x62   :  { %1855 = vmatprep.mubr.msk.bf16.mxu0 %vm141_vm4, %v125_v17  ;;  %v487_v29 = vld [vmem:[%s3052_s7] sm:$0x7]  ;;  %v116_v32 = vld [vmem:[%s3045_s0 + $0x38] sm:$0xff]  ;;  %v303_v34 = vpack.c.bf16 %v292_v27, %v291_v26  ;;  %v118_v36 = vld [vmem:[%s3045_s0 + $0x48] sm:$0xff] }
  0x63   :  { %1856 = vmatmul.mubr.msk.bf16.vlgmr.msra.gmra.mrb[0].mxu0 %vm141_vm4, %v126_v24  ;;  %v524_v33 = vand.u32 %v522_v23, %v487_v29  ;;  %v117_v35 = vld [vmem:[%s3045_s0 + $0x40] sm:$0xff]  ;;  %v128_v37 = vpack.c.bf16 %v116_v32, %v115_v31  ;;  %v293_v39 = vld [vmem:[%s3046_s1 + $0x50] sm:$0xff]  ;;  %v294_v40 = vld [vmem:[%s3046_s1 + $0x58] sm:$0xff] }
  0x64   :  { %1859 = vmatprep.mubr.msk.bf16.mxu0 %vm141_vm4, %v127_v28  ;;  %v129_v38 = vpack.c.bf16 %v118_v36, %v117_v35  ;;  %v295_v41 = vld [vmem:[%s3046_s1 + $0x60] sm:$0xff]  ;;  %v296_v42 = vld [vmem:[%s3046_s1 + $0x68] sm:$0xff]  ;;  %v119_v43 = vld [vmem:[%s3045_s0 + $0x50] sm:$0xff]  ;;  %v304_v46 = vpack.c.bf16 %v294_v40, %v293_v39 }
  0x65   :  { %1889 = vmatprep.subr.bf16.mxu0 %v524_v33  ;;  %v120_v44 = vld [vmem:[%s3045_s0 + $0x58] sm:$0xff]  ;;  %v121_v45 = vld [vmem:[%s3045_s0 + $0x60] sm:$0xff]  ;;  %v305_v49 = vpack.c.bf16 %v296_v42, %v295_v41  ;;  %v122_v50 = vld [vmem:[%s3045_s0 + $0x68] sm:$0xff] }
  0x66   :  { %1890 = vmatpush3.bf16.msra.mxu0 %v524_v33  ;;  %v1997_v47 = vld [vmem:[%s3055_s10] ss:$8 sps:$4 sm:$0xff]   ;;  %v1999_v48 = vld [vmem:[%s3055_s10 + $0x4] ss:$8 sps:$4 sm:$0xff]   ;;  %v2002_v51 = vld [vmem:[%s3055_s10 + $0x14] ss:$8 sps:$4 sm:$0xff]   ;;  %v130_v52 = vpack.c.bf16 %v120_v44, %v119_v43  ;;  %v131_v55 = vpack.c.bf16 %v122_v50, %v121_v45 }
  0x67   :  { %767 = vmatprep.subr.bf16.mxu1 %v1999_v48  ;;  %v2000_v53 = vld [vmem:[%s3055_s10 + $0x10] ss:$8 sps:$4 sm:$0xff]   ;;  %v2005_v56 = vld [vmem:[%s3055_s10 + $0x24] ss:$8 sps:$4 sm:$0xff]   ;;  %v2003_v62 = vld [vmem:[%s3055_s10 + $0x20] ss:$8 sps:$4 sm:$0xff]  }
  0x68   :  { %1878 = vmatmul.mubr.msk.bf16.gmra.mrb[4].mxu1 %vm321_vm1, %v302_v30  ;;  %v297_v54 = vld [vmem:[%s3046_s1 + $0x70] sm:$0xff]  ;;  %v298_v57 = vld [vmem:[%s3046_s1 + $0x78] sm:$0xff]  ;;  %v463_v60 = vld [vmem:[%s3047_s2] sm:$0xff] }
  0x69   :  { %1881 = vmatprep.mubr.msk.bf16.mxu1 %vm321_vm1, %v303_v34  ;;  %768 = vmatpush1.bf16.msra.mxu1 %v1997_v47  ;;  %v123_v58 = vld [vmem:[%s3045_s0 + $0x70] sm:$0xff]  ;;  %v124_v59 = vld [vmem:[%s3045_s0 + $0x78] sm:$0xff]  ;;  %v464_v61 = vld [vmem:[%s3047_s2 + $0x8] sm:$0xff]  ;;  %v306_v0 = vpack.c.bf16 %v298_v57, %v297_v54  ;;  %v2207_v34 = vmov 0  }
  0x6a   :  { %769 = vmatprep.subr.bf16.mxu1 %v2002_v51  ;;  %v2008_v63 = vld [vmem:[%s3055_s10 + $0x34] ss:$8 sps:$4 sm:$0xff]   ;;  %v2006_v1 = vld [vmem:[%s3055_s10 + $0x30] ss:$8 sps:$4 sm:$0xff]   ;;  %v2011_v2 = vld [vmem:[%s3055_s10 + $0x44] ss:$8 sps:$4 sm:$0xff]   ;;  %v132_v3 = vpack.c.bf16 %v124_v59, %v123_v58  ;;  %v479_v4 = vpack.c.bf16 %v464_v61, %v463_v60 }
  0x6b   :  { %1860 = vmatmul.mubr.msk.bf16.gmra.mrb[4].mxu0 %vm141_vm4, %v128_v37  ;;  %v2009_v5 = vld [vmem:[%s3055_s10 + $0x40] ss:$8 sps:$4 sm:$0xff]   ;;  %v465_v6 = vld [vmem:[%s3047_s2 + $0x10] sm:$0xff]  ;;  %v466_v7 = vld [vmem:[%s3047_s2 + $0x18] sm:$0xff] }
  0x6c   :  { %1863 = vmatprep.mubr.msk.bf16.mxu0 %vm141_vm4, %v129_v38  ;;  %v2014_v8 = vld [vmem:[%s3055_s10 + $0x54] ss:$8 sps:$4 sm:$0xff]   ;;  %v467_v9 = vld [vmem:[%s3047_s2 + $0x20] sm:$0xff]  ;;  %v468_v10 = vld [vmem:[%s3047_s2 + $0x28] sm:$0xff]  ;;  %v480_v12 = vpack.c.bf16 %v466_v7, %v465_v6 }
  0x6d   :  { %770 = vmatpush1.bf16.msra.mxu1 %v2000_v53  ;;  %v2012_v11 = vld [vmem:[%s3055_s10 + $0x50] ss:$8 sps:$4 sm:$0xff]   ;;  %v481_v13 = vpack.c.bf16 %v468_v10, %v467_v9  ;;  %v471_v16 = vld [vmem:[%s3047_s2 + $0x40] sm:$0xff]  ;;  %v472_v17 = vld [vmem:[%s3047_s2 + $0x48] sm:$0xff] }
  0x6e   :  { %771 = vmatprep.subr.bf16.mxu1 %v2005_v56  ;;  %v469_v14 = vld [vmem:[%s3047_s2 + $0x30] sm:$0xff]  ;;  %v470_v15 = vld [vmem:[%s3047_s2 + $0x38] sm:$0xff]  ;;  %v483_v19 = vpack.c.bf16 %v472_v17, %v471_v16  ;;  %v475_v22 = vld [vmem:[%s3047_s2 + $0x60] sm:$0xff] }
  0x6f   :  { %v482_v18 = vpack.c.bf16 %v470_v15, %v469_v14  ;;  %v473_v20 = vld [vmem:[%s3047_s2 + $0x50] sm:$0xff]  ;;  %v474_v21 = vld [vmem:[%s3047_s2 + $0x58] sm:$0xff]  ;;  %v476_v23 = vld [vmem:[%s3047_s2 + $0x68] sm:$0xff] }
  0x70   :  { %1882 = vmatmul.mubr.msk.bf16.gmra.mrb[8].mxu1 %vm321_vm1, %v304_v46  ;;  %v484_v24 = vpack.c.bf16 %v474_v21, %v473_v20  ;;  %v485_v25 = vpack.c.bf16 %v476_v23, %v475_v22  ;;  %v477_v26 = vld [vmem:[%s3047_s2 + $0x70] sm:$0xff]  ;;  %v478_v27 = vld [vmem:[%s3047_s2 + $0x78] sm:$0xff]  ;;  %v2017_v29 = vld [vmem:[%s3055_s10 + $0x64] ss:$8 sps:$4 sm:$0xff]  }
  0x71   :  { %1885 = vmatprep.mubr.msk.bf16.mxu1 %vm321_vm1, %v305_v49  ;;  %772 = vmatpush1.bf16.msra.mxu1 %v2003_v62  ;;  %v486_v28 = vpack.c.bf16 %v478_v27, %v477_v26  ;;  %v2015_v30 = vld [vmem:[%s3055_s10 + $0x60] ss:$8 sps:$4 sm:$0xff]   ;;  %v2020_v31 = vld [vmem:[%s3055_s10 + $0x74] ss:$8 sps:$4 sm:$0xff]   ;;  %v2018_v32 = vld [vmem:[%s3055_s10 + $0x70] ss:$8 sps:$4 sm:$0xff]  }
  0x72   :  { %773 = vmatprep.subr.bf16.mxu1 %v2008_v63  ;;  %v2023_v33 = vld [vmem:[%s3054_s9 + $0x4] ss:$8 sps:$4 sm:$0xff]   ;;  %v2589_v36 = vld [vmem:[%s3056_s11] ss:$8 sps:$4 sm:$0xff]   ;;  %v2595_v37 = vld [vmem:[%s3056_s11 + $0x14] ss:$8 sps:$4 sm:$0xff]  }
  0x73   :  { %1864 = vmatmul.mubr.msk.bf16.gmra.mrb[8].mxu0 %vm141_vm4, %v130_v52  ;;  %v2584_v35 = vld [vmem:[%s3056_s11 + $0x4] ss:$8 sps:$4 sm:$0xff]   ;;  %v2601_v38 = vld [vmem:[%s3056_s11 + $0x10] ss:$8 sps:$4 sm:$0xff]   ;;  %v2613_v40 = vld [vmem:[%s3056_s11 + $0x20] ss:$8 sps:$4 sm:$0xff]  }
  0x74   :  { %1867 = vmatprep.mubr.msk.bf16.mxu0 %vm141_vm4, %v131_v55  ;;  %1177 = vmatprep.subr.bf16.mxu0 %v2584_v35  ;;  %v2608_v39 = vld [vmem:[%s3056_s11 + $0x24] ss:$8 sps:$4 sm:$0xff]   ;;  %v2619_v41 = vld [vmem:[%s3056_s11 + $0x34] ss:$8 sps:$4 sm:$0xff]   ;;  %v2625_v42 = vld [vmem:[%s3056_s11 + $0x30] ss:$8 sps:$4 sm:$0xff]  }
  0x75   :  { %774 = vmatpush1.bf16.msra.mxu1 %v2006_v1  ;;  %v2632_v43 = vld [vmem:[%s3056_s11 + $0x44] ss:$8 sps:$4 sm:$0xff]   ;;  %v2637_v44 = vld [vmem:[%s3056_s11 + $0x40] ss:$8 sps:$4 sm:$0xff]   ;;  %v2643_v45 = vld [vmem:[%s3056_s11 + $0x54] ss:$8 sps:$4 sm:$0xff]  }
  0x76   :  { %775 = vmatprep.subr.bf16.mxu1 %v2011_v2  ;;  %v2649_v46 = vld [vmem:[%s3056_s11 + $0x50] ss:$8 sps:$4 sm:$0xff]   ;;  %v2656_v47 = vld [vmem:[%s3056_s11 + $0x64] ss:$8 sps:$4 sm:$0xff]   ;;  %v2661_v48 = vld [vmem:[%s3056_s11 + $0x60] ss:$8 sps:$4 sm:$0xff]  }
  0x77   :  { %v2667_v49 = vld [vmem:[%s3056_s11 + $0x74] ss:$8 sps:$4 sm:$0xff]   ;;  %v2673_v50 = vld [vmem:[%s3056_s11 + $0x70] ss:$8 sps:$4 sm:$0xff]   ;;  %v2677_v51 = vld [vmem:[#allocation4] ss:$0 sm:$0xff] }
  0x78   :  { %1886 = vmatmul.mubr.msk.bf16.gmra.mrb[12].mxu1 %vm321_vm1, %v306_v0  ;;  %v2680_v55 = vld [vmem:[#allocation2] ss:$0 sm:$0xff]  ;;  %v2026_v15 = vld [vmem:[%s3054_s9 + $0x14] ss:$8 sps:$4 sm:$0xff]   ;;  %v2024_v26 = vld [vmem:[%s3054_s9 + $0x10] ss:$8 sps:$4 sm:$0xff]  }
  0x79   :  { %776 = vmatpush1.bf16.msra.mxu1 %v2009_v5  ;;  %799 = vmatprep.mubr.bf16.mxu1 %v2207_v34  ;;  %v2021_v10 = vld [vmem:[%s3054_s9] ss:$8 sps:$4 sm:$0xff]  }
  0x7a   :  { %777 = vmatprep.subr.bf16.mxu1 %v2014_v8 }
  0x7b   :  { %1868 = vmatmul.mubr.msk.bf16.gmra.mrb[12].mxu0 %vm141_vm4, %v132_v3 }
  0x7c   :  { %1891 = vmatprep.mubr.msk.bf16.mxu0 %vm495_vm5, %v479_v4 }
  0x7d   :  { %778 = vmatpush1.bf16.msra.mxu1 %v2012_v11 }
  0x7e   :  { %779 = vmatprep.subr.bf16.mxu1 %v2017_v29 }
  0x81   :  { %780 = vmatpush1.bf16.msra.mxu1 %v2015_v30 }
  0x82   :  { %781 = vmatprep.subr.bf16.mxu1 %v2020_v31  ;;  %v2029_v31 = vld [vmem:[%s3054_s9 + $0x24] ss:$8 sps:$4 sm:$0xff]  }
  0x83   :  { %1892 = vmatmul.mubr.msk.bf16.vlgmr.msra.gmra.mrb[16].mxu0 %vm495_vm5, %v480_v12 }
  0x84   :  { %1895 = vmatprep.mubr.msk.bf16.mxu0 %vm495_vm5, %v481_v13  ;;  %1178 = vmatpush1.bf16.msra.mxu0 %v2589_v36 }
  0x85   :  { %782 = vmatpush1.bf16.msra.mxu1 %v2018_v32  ;;  %1179 = vmatprep.subr.bf16.mxu0 %v2595_v37 }
  0x86   :  { %960 = vmatprep.subr.bf16.mxu1 %v2023_v33 }
  0x88   :  { %1180 = vmatpush1.bf16.msra.mxu0 %v2601_v38 }
  0x89   :  { %1181 = vmatprep.subr.bf16.mxu0 %v2608_v39 }
  0x8b   :  { %1896 = vmatmul.mubr.msk.bf16.gmra.mrb[20].mxu0 %vm495_vm5, %v482_v18 }
  0x8c   :  { %1899 = vmatprep.mubr.msk.bf16.mxu0 %vm495_vm5, %v483_v19  ;;  %1182 = vmatpush1.bf16.msra.mxu0 %v2613_v40 }
  0x8d   :  { %1183 = vmatprep.subr.bf16.mxu0 %v2619_v41 }
  0x90   :  { %1184 = vmatpush1.bf16.msra.mxu0 %v2625_v42 }
  0x91   :  { %1185 = vmatprep.subr.bf16.mxu0 %v2632_v43 }
  0x93   :  { %1900 = vmatmul.mubr.msk.bf16.gmra.mrb[24].mxu0 %vm495_vm5, %v484_v24 }
  0x94   :  { %1903 = vmatprep.mubr.msk.bf16.mxu0 %vm495_vm5, %v485_v25  ;;  %1186 = vmatpush1.bf16.msra.mxu0 %v2637_v44 }
  0x95   :  { %1187 = vmatprep.subr.bf16.mxu0 %v2643_v45 }
  0x98   :  { %1188 = vmatpush1.bf16.msra.mxu0 %v2649_v46 }
  0x99   :  { %1189 = vmatprep.subr.bf16.mxu0 %v2656_v47 }
  0x9b   :  { %1904 = vmatmul.mubr.msk.bf16.gmra.mrb[28].mxu0 %vm495_vm5, %v486_v28 }
  0x9c   :  { %1209 = vmatprep.mubr.bf16.mxu0 %v2207_v34  ;;  %1190 = vmatpush1.bf16.msra.mxu0 %v2661_v48 }
  0x9d   :  { %1191 = vmatprep.subr.bf16.mxu0 %v2667_v49 }
  0xa0   :  { %1192 = vmatpush1.bf16.msra.mxu0 %v2673_v50 }
 0x133   :  { %v1875_v52 = vpop.f32.mrb[0].mxu1 }
 0x134   :  { %v393_v53 = vadd.f32 %v1875_v52, %v2677_v51  ;;  %v384_v54 = vpop.f32.mrb[1].mxu1 }
 0x135   :  { %v385_v56 = vadd.f32 %v2677_v51, %v384_v54  ;;  %v1876_v57 = vpop.f32.mrb[2].mxu1 }
 0x136   :  { %v396_v58 = vadd.f32 %v1876_v57, %v2677_v51  ;;  %v387_v59 = vpop.f32.mrb[3].mxu1  ;;  %v1857_v60 = vpop.f32.mrb[0].mxu0  ;;  %v449_v0 = vmax.f32 %v393_v53, 0.0 }
 0x137   :  { %v388_v61 = vadd.f32 %v2677_v51, %v387_v59  ;;  %v213_v62 = vadd.f32 %v1857_v60, %v2680_v55  ;;  %v204_v63 = vpop.f32.mrb[1].mxu0  ;;  %v447_v4 = vmax.f32 %v385_v56, 0.0 }
 0x138   :  { %v450_v1 = vmax.f32 %v396_v58, 0.0  ;;  %v205_v2 = vadd.f32 %v2680_v55, %v204_v63  ;;  %v1858_v3 = vpop.f32.mrb[2].mxu0 }
 0x139   :  { %v448_v5 = vmax.f32 %v388_v61, 0.0  ;;  %v269_v6 = vmax.f32 %v213_v62, 0.0  ;;  %v216_v7 = vadd.f32 %v1858_v3, %v2680_v55  ;;  %v207_v8 = vpop.f32.mrb[3].mxu0  ;;  %v2027_v61 = vld [vmem:[%s3054_s9 + $0x20] ss:$8 sps:$4 sm:$0xff]  }
 0x13a   :  { %v664_v9 = vpack.c.bf16 %v450_v1, %v449_v0  ;;  %v267_v11 = vmax.f32 %v205_v2, 0.0  ;;  %v208_v12 = vadd.f32 %v2680_v55, %v207_v8  ;;  %v2032_v2 = vld [vmem:[%s3054_s9 + $0x34] ss:$8 sps:$4 sm:$0xff]  }
 0x13b   :  { %v663_v13 = vpack.c.bf16 %v448_v5, %v447_v4  ;;  %v1879_v14 = vpop.f32.mrb[4].mxu1  ;;  %v270_v16 = vmax.f32 %v216_v7, 0.0 }
 0x13c   :  { %v409_v17 = vadd.f32 %v1879_v14, %v2677_v51  ;;  %v400_v18 = vpop.f32.mrb[5].mxu1  ;;  %v268_v19 = vmax.f32 %v208_v12, 0.0 }
 0x13d   :  { %800 = vmatmul.mubr.bf16.vlgmr.msra.gmra.mrb[16].mxu1 %v663_v13  ;;  %v401_v20 = vadd.f32 %v2677_v51, %v400_v18  ;;  %v1880_v21 = vpop.f32.mrb[6].mxu1  ;;  %v2697_v22 = vpack.c.bf16 %v270_v16, %v269_v6 }
 0x13e   :  { %961 = vmatpush1.bf16.msra.mxu1 %v2021_v10  ;;  %v453_v23 = vmax.f32 %v409_v17, 0.0  ;;  %v412_v24 = vadd.f32 %v1880_v21, %v2677_v51  ;;  %v403_v25 = vpop.f32.mrb[7].mxu1  ;;  %809 = vmatprep.mubr.bf16.mxu1 %v2207_v34  ;;  %v2704_v27 = vpack.c.bf16 %v268_v19, %v267_v11  ;;  %v1861_v28 = vpop.f32.mrb[4].mxu0  ;;  %v2069_v11 = vld [vmem:[%s3058_s13 + $0x40] sm:$0xff]  }
 0x13f   :  { %v451_v29 = vmax.f32 %v401_v20, 0.0  ;;  %v404_v30 = vadd.f32 %v2677_v51, %v403_v25  ;;  %962 = vmatprep.subr.bf16.mxu1 %v2026_v15  ;;  %v229_v32 = vadd.f32 %v1861_v28, %v2680_v55  ;;  %v220_v33 = vpop.f32.mrb[5].mxu0  ;;  %v2035_v19 = vld [vmem:[%s3054_s9 + $0x44] ss:$8 sps:$4 sm:$0xff]   ;;  %1789 = vmatprep.subr.bf16.mxu0 %v2069_v11 }
 0x140   :  { %v454_v52 = vmax.f32 %v412_v24, 0.0  ;;  %v221_v53 = vadd.f32 %v2680_v55, %v220_v33  ;;  %v1862_v54 = vpop.f32.mrb[6].mxu0  ;;  %v2053_v11 = vld [vmem:[%s3054_s9 + $0x64] ss:$8 sps:$4 sm:$0xff]  }
 0x141   :  { %v452_v56 = vmax.f32 %v404_v30, 0.0  ;;  %v273_v57 = vmax.f32 %v229_v32, 0.0  ;;  %v232_v58 = vadd.f32 %v1862_v54, %v2680_v55  ;;  %v223_v59 = vpop.f32.mrb[7].mxu0  ;;  %v2033_v32 = vld [vmem:[%s3054_s9 + $0x40] ss:$8 sps:$4 sm:$0xff]  }
 0x142   :  { %v2713_v60 = vpack.c.bf16 %v454_v52, %v453_v23  ;;  %963 = vmatpush1.bf16.msra.mxu1 %v2024_v26  ;;  %v271_v62 = vmax.f32 %v221_v53, 0.0  ;;  %v224_v63 = vadd.f32 %v2680_v55, %v223_v59 }
 0x143   :  { %v665_v0 = vpack.c.bf16 %v452_v56, %v451_v29  ;;  %964 = vmatprep.subr.bf16.mxu1 %v2029_v31  ;;  %v1883_v1 = vpop.f32.mrb[8].mxu1  ;;  %v274_v3 = vmax.f32 %v232_v58, 0.0  ;;  %v2044_v56 = vld [vmem:[%s3054_s9 + $0x54] ss:$8 sps:$4 sm:$0xff]  }
 0x144   :  { %v425_v4 = vadd.f32 %v1883_v1, %v2677_v51  ;;  %v416_v5 = vpop.f32.mrb[9].mxu1  ;;  %v272_v6 = vmax.f32 %v224_v63, 0.0 }
 0x145   :  { %810 = vmatmul.mubr.bf16.gmra.mrb[20].mxu1 %v664_v9  ;;  %v417_v7 = vadd.f32 %v2677_v51, %v416_v5  ;;  %v1884_v8 = vpop.f32.mrb[10].mxu1  ;;  %v2724_v10 = vpack.c.bf16 %v274_v3, %v273_v57  ;;  %v2030_v9 = vld [vmem:[%s3054_s9 + $0x30] ss:$8 sps:$4 sm:$0xff]  }
 0x146   :  { %819 = vmatprep.mubr.bf16.mxu1 %v2207_v34  ;;  %965 = vmatpush1.bf16.msra.mxu1 %v2027_v61  ;;  %v457_v12 = vmax.f32 %v425_v4, 0.0  ;;  %v428_v13 = vadd.f32 %v1884_v8, %v2677_v51  ;;  %v419_v14 = vpop.f32.mrb[11].mxu1  ;;  %v2734_v15 = vpack.c.bf16 %v272_v6, %v271_v62  ;;  %v1865_v16 = vpop.f32.mrb[8].mxu0  ;;  %v2042_v5 = vld [vmem:[%s3054_s9 + $0x50] ss:$8 sps:$4 sm:$0xff]  }
 0x147   :  { %v455_v17 = vmax.f32 %v417_v7, 0.0  ;;  %v420_v18 = vadd.f32 %v2677_v51, %v419_v14  ;;  %966 = vmatprep.subr.bf16.mxu1 %v2032_v2  ;;  %v245_v20 = vadd.f32 %v1865_v16, %v2680_v55  ;;  %v236_v21 = vpop.f32.mrb[9].mxu0 }
 0x148   :  { %v458_v23 = vmax.f32 %v428_v13, 0.0  ;;  %v237_v24 = vadd.f32 %v2680_v55, %v236_v21  ;;  %v1866_v25 = vpop.f32.mrb[10].mxu0 }
 0x149   :  { %v456_v26 = vmax.f32 %v420_v18, 0.0  ;;  %v277_v28 = vmax.f32 %v245_v20, 0.0  ;;  %v248_v29 = vadd.f32 %v1866_v25, %v2680_v55  ;;  %v239_v30 = vpop.f32.mrb[11].mxu0 }
 0x14a   :  { %v2743_v31 = vpack.c.bf16 %v458_v23, %v457_v12  ;;  %967 = vmatpush1.bf16.msra.mxu1 %v2030_v9  ;;  %v275_v33 = vmax.f32 %v237_v24, 0.0  ;;  %v240_v52 = vadd.f32 %v2680_v55, %v239_v30 }
 0x14b   :  { %v2749_v53 = vpack.c.bf16 %v456_v26, %v455_v17  ;;  %968 = vmatprep.subr.bf16.mxu1 %v2035_v19  ;;  %v1887_v54 = vpop.f32.mrb[12].mxu1  ;;  %v278_v57 = vmax.f32 %v248_v29, 0.0 }
 0x14c   :  { %v441_v58 = vadd.f32 %v1887_v54, %v2677_v51  ;;  %v432_v59 = vpop.f32.mrb[13].mxu1  ;;  %v276_v61 = vmax.f32 %v240_v52, 0.0  ;;  %v2060_v52 = vld [vmem:[%s3054_s9 + $0x70] ss:$8 sps:$4 sm:$0xff]  }
 0x14d   :  { %820 = vmatmul.mubr.bf16.gmra.mrb[24].mxu1 %v665_v0  ;;  %v433_v62 = vadd.f32 %v2677_v51, %v432_v59  ;;  %v1888_v63 = vpop.f32.mrb[14].mxu1  ;;  %v2756_v1 = vpack.c.bf16 %v278_v57, %v277_v28  ;;  %v2062_v28 = vld [vmem:[%s3054_s9 + $0x74] ss:$8 sps:$4 sm:$0xff]  }
 0x14e   :  { %829 = vmatprep.mubr.bf16.mxu1 %v2207_v34  ;;  %969 = vmatpush1.bf16.msra.mxu1 %v2033_v32  ;;  %v461_v2 = vmax.f32 %v441_v58, 0.0  ;;  %v444_v3 = vadd.f32 %v1888_v63, %v2677_v51  ;;  %v435_v4 = vpop.f32.mrb[15].mxu1  ;;  %v2763_v6 = vpack.c.bf16 %v276_v61, %v275_v33  ;;  %v1869_v7 = vpop.f32.mrb[12].mxu0  ;;  %v2786_v32 = vld [vmem:[#allocation6] ss:$0 sm:$0xff] }
 0x14f   :  { %v459_v0 = vmax.f32 %v433_v62, 0.0  ;;  %v436_v8 = vadd.f32 %v2677_v51, %v435_v4  ;;  %970 = vmatprep.subr.bf16.mxu1 %v2044_v56  ;;  %v261_v12 = vadd.f32 %v1869_v7, %v2680_v55  ;;  %v252_v13 = vpop.f32.mrb[13].mxu0  ;;  %v2051_v51 = vld [vmem:[%s3054_s9 + $0x60] ss:$8 sps:$4 sm:$0xff]  }
 0x150   :  { %v462_v14 = vmax.f32 %v444_v3, 0.0  ;;  %v253_v9 = vadd.f32 %v2680_v55, %v252_v13  ;;  %v1870_v16 = vpop.f32.mrb[14].mxu0 }
 0x151   :  { %v460_v17 = vmax.f32 %v436_v8, 0.0  ;;  %v281_v18 = vmax.f32 %v261_v12, 0.0  ;;  %v264_v19 = vadd.f32 %v1870_v16, %v2680_v55  ;;  %v255_v20 = vpop.f32.mrb[15].mxu0  ;;  %v2071_v8 = vld [vmem:[%s3058_s13 + $0x48] sm:$0xff]  }
 0x152   :  { %v2772_v21 = vpack.c.bf16 %v462_v14, %v461_v2  ;;  %971 = vmatpush1.bf16.msra.mxu1 %v2042_v5  ;;  %v279_v23 = vmax.f32 %v253_v9, 0.0  ;;  %v256_v24 = vadd.f32 %v2680_v55, %v255_v20  ;;  %v2070_v5 = vld [vmem:[%s3058_s13] sm:$0xff]   ;;  %v2072_v16 = vld [vmem:[%s3058_s13 + $0x8] sm:$0xff]  }
 0x153   :  { %v2778_v25 = vpack.c.bf16 %v460_v17, %v459_v0  ;;  %972 = vmatprep.subr.bf16.mxu1 %v2053_v11  ;;  %v282_v26 = vmax.f32 %v264_v19, 0.0  ;;  %v2073_v19 = vld [vmem:[%s3058_s13 + $0x50] sm:$0xff]  }
 0x154   :  { %v280_v29 = vmax.f32 %v256_v24, 0.0  ;;  %v2074_v24 = vld [vmem:[%s3058_s13 + $0x10] sm:$0xff]  }
 0x155   :  { %830 = vmatmul.mubr.bf16.gmra.mrb[28].mxu1 %v2713_v60  ;;  %v2784_v30 = vpack.c.bf16 %v282_v26, %v281_v18 }
 0x156   :  { %839 = vmatprep.mubr.bf16.mxu1 %v2207_v34  ;;  %973 = vmatpush1.bf16.msra.mxu1 %v2051_v51  ;;  %v2789_v33 = vpack.c.bf16 %v280_v29, %v279_v23  ;;  %v1893_v55 = vpop.f32.mrb[16].mxu0  ;;  %v2075_v29 = vld [vmem:[%s3058_s13 + $0x58] sm:$0xff]  }
 0x157   :  { %v569_v54 = vadd.f32 %v1893_v55, %v2786_v32  ;;  %v560_v56 = vpop.f32.mrb[17].mxu0  ;;  %974 = vmatprep.subr.bf16.mxu1 %v2062_v28 }
 0x158   :  { %v561_v60 = vadd.f32 %v2786_v32, %v560_v56  ;;  %v1894_v57 = vpop.f32.mrb[18].mxu0 }
 0x159   :  { %v625_v58 = vmax.f32 %v569_v54, 0.0  ;;  %v572_v59 = vadd.f32 %v1894_v57, %v2786_v32  ;;  %v563_v61 = vpop.f32.mrb[19].mxu0 }
 0x15a   :  { %v623_v62 = vmax.f32 %v561_v60, 0.0  ;;  %975 = vmatpush1.bf16.msra.mxu1 %v2060_v52  ;;  %v564_v63 = vadd.f32 %v2786_v32, %v563_v61 }
 0x15b   :  { %v626_v2 = vmax.f32 %v572_v59, 0.0  ;;  %1907 = vmatprep.subr.bf16.mxu1 %v2584_v35 }
 0x15c   :  { %v624_v3 = vmax.f32 %v564_v63, 0.0 }
 0x15d   :  { %840 = vmatmul.mubr.bf16.gmra.mrb[32].mxu1 %v2749_v53  ;;  %v1074_v4 = vpack.c.bf16 %v626_v2, %v625_v58  ;;  %v2076_v58 = vld [vmem:[%s3058_s13 + $0x18] sm:$0xff]  }
 0x15e   :  { %849 = vmatprep.mubr.bf16.mxu1 %v2207_v34  ;;  %v1073_v7 = vpack.c.bf16 %v624_v3, %v623_v62  ;;  %v1897_v0 = vpop.f32.mrb[20].mxu0  ;;  %v2077_v62 = vld [vmem:[%s3058_s13 + $0x60] sm:$0xff]  }
 0x15f   :  { %v585_v11 = vadd.f32 %v1897_v0, %v2786_v32  ;;  %v576_v12 = vpop.f32.mrb[21].mxu0 }
 0x160   :  { %1210 = vmatmul.mubr.bf16.vlgmr.msra.gmra.mrb[32].mxu0 %v1073_v7  ;;  %v577_v35 = vadd.f32 %v2786_v32, %v576_v12  ;;  %v1898_v53 = vpop.f32.mrb[22].mxu0 }
 0x161   :  { %v629_v13 = vmax.f32 %v585_v11, 0.0  ;;  %1219 = vmatprep.mubr.bf16.mxu0 %v2207_v34  ;;  %v588_v14 = vadd.f32 %v1898_v53, %v2786_v32  ;;  %v579_v9 = vpop.f32.mrb[23].mxu0  ;;  %1790 = vmatpush3.bf16.msra.mxu0 %v2070_v5 }
 0x162   :  { %v627_v17 = vmax.f32 %v577_v35, 0.0  ;;  %v580_v18 = vadd.f32 %v2786_v32, %v579_v9  ;;  %1791 = vmatprep.subr.bf16.mxu0 %v2071_v8 }
 0x163   :  { %v630_v20 = vmax.f32 %v588_v14, 0.0 }
 0x164   :  { %v628_v51 = vmax.f32 %v580_v18, 0.0 }
 0x165   :  { %850 = vmatmul.mubr.bf16.gmra.mrb[36].mxu1 %v2743_v31  ;;  %v1076_v23 = vpack.c.bf16 %v630_v20, %v629_v13  ;;  %1792 = vmatpush3.bf16.msra.mxu0 %v2072_v16 }
 0x166   :  { %859 = vmatprep.mubr.bf16.mxu1 %v2207_v34  ;;  %v1075_v26 = vpack.c.bf16 %v628_v51, %v627_v17  ;;  %v1901_v28 = vpop.f32.mrb[24].mxu0  ;;  %1793 = vmatprep.subr.bf16.mxu0 %v2073_v19 }
 0x167   :  { %v601_v55 = vadd.f32 %v1901_v28, %v2786_v32  ;;  %v592_v52 = vpop.f32.mrb[25].mxu0 }
 0x168   :  { %1220 = vmatmul.mubr.bf16.gmra.mrb[36].mxu0 %v1074_v4  ;;  %v593_v31 = vadd.f32 %v2786_v32, %v592_v52  ;;  %v1902_v54 = vpop.f32.mrb[26].mxu0  ;;  %v2078_v4 = vld [vmem:[%s3058_s13 + $0x20] sm:$0xff]  }
 0x169   :  { %1229 = vmatprep.mubr.bf16.mxu0 %v2207_v34  ;;  %v633_v56 = vmax.f32 %v601_v55, 0.0  ;;  %v604_v60 = vadd.f32 %v1902_v54, %v2786_v32  ;;  %v595_v57 = vpop.f32.mrb[27].mxu0  ;;  %1794 = vmatpush3.bf16.msra.mxu0 %v2074_v24 }
 0x16a   :  { %v631_v59 = vmax.f32 %v593_v31, 0.0  ;;  %v596_v61 = vadd.f32 %v2786_v32, %v595_v57  ;;  %1795 = vmatprep.subr.bf16.mxu0 %v2075_v29 }
 0x16b   :  { %v634_v63 = vmax.f32 %v604_v60, 0.0 }
 0x16c   :  { %v632_v2 = vmax.f32 %v596_v61, 0.0 }
 0x16d   :  { %860 = vmatmul.mubr.bf16.gmra.mrb[40].mxu1 %v2778_v25  ;;  %v1078_v3 = vpack.c.bf16 %v634_v63, %v633_v56  ;;  %1796 = vmatpush3.bf16.msra.mxu0 %v2076_v58 }
 0x16e   :  { %869 = vmatprep.mubr.bf16.mxu1 %v2207_v34  ;;  %v1077_v5 = vpack.c.bf16 %v632_v2, %v631_v59  ;;  %v1905_v7 = vpop.f32.mrb[28].mxu0  ;;  %1797 = vmatprep.subr.bf16.mxu0 %v2077_v62 }
 0x16f   :  { %v617_v0 = vadd.f32 %v1905_v7, %v2786_v32  ;;  %v608_v8 = vpop.f32.mrb[29].mxu0 }
 0x170   :  { %1230 = vmatmul.mubr.bf16.gmra.mrb[40].mxu0 %v1075_v26  ;;  %v609_v11 = vadd.f32 %v2786_v32, %v608_v8  ;;  %v1906_v12 = vpop.f32.mrb[30].mxu0 }
 0x171   :  { %1239 = vmatprep.mubr.bf16.mxu0 %v2207_v34  ;;  %v637_v25 = vmax.f32 %v617_v0, 0.0  ;;  %v620_v35 = vadd.f32 %v1906_v12, %v2786_v32  ;;  %v611_v53 = vpop.f32.mrb[31].mxu0  ;;  %1798 = vmatpush3.bf16.msra.mxu0 %v2078_v4 }
 0x172   :  { %v635_v13 = vmax.f32 %v609_v11, 0.0  ;;  %v612_v14 = vadd.f32 %v2786_v32, %v611_v53 }
 0x173   :  { %v638_v9 = vmax.f32 %v620_v35, 0.0 }
 0x174   :  { %v636_v16 = vmax.f32 %v612_v14, 0.0 }
 0x175   :  { %870 = vmatmul.mubr.bf16.gmra.mrb[44].mxu1 %v2772_v21  ;;  %v1080_v17 = vpack.c.bf16 %v638_v9, %v637_v25  ;;  %v1322_v21 = vld [vmem:[#allocation7] sm:$0x3] }
 0x176   :  { %992 = vmatprep.mubr.bf16.mxu1 %v2207_v34  ;;  %v1079_v18 = vpack.c.bf16 %v636_v16, %v635_v13 }
 0x178   :  { %1240 = vmatmul.mubr.bf16.gmra.mrb[44].mxu0 %v1076_v23 }
 0x179   :  { %1249 = vmatprep.mubr.bf16.mxu0 %v2207_v34 }
 0x17d   :  { %993 = vmatmul.mubr.bf16.vlgmr.msra.gmra.mrb[16].mxu1 %v2704_v27 }
 0x17e   :  { %1915 = vmatpush1.bf16.msra.mxu1 %v2589_v36  ;;  %1002 = vmatprep.mubr.bf16.mxu1 %v2207_v34  ;;  %v2079_v36 = vld [vmem:[%s3058_s13 + $0x68] sm:$0xff]  }
 0x17f   :  { %1908 = vmatprep.subr.bf16.mxu1 %v2595_v37  ;;  %v2080_v37 = vld [vmem:[%s3058_s13 + $0x28] sm:$0xff]   ;;  %1799 = vmatprep.subr.bf16.mxu0 %v2079_v36 }
 0x180   :  { %1250 = vmatmul.mubr.bf16.gmra.mrb[48].mxu0 %v1077_v5 }
 0x181   :  { %1259 = vmatprep.mubr.bf16.mxu0 %v2207_v34  ;;  %1800 = vmatpush3.bf16.msra.mxu0 %v2080_v37 }
 0x182   :  { %1916 = vmatpush1.bf16.msra.mxu1 %v2601_v38  ;;  %v2081_v38 = vld [vmem:[%s3058_s13 + $0x70] sm:$0xff]  }
 0x183   :  { %1909 = vmatprep.subr.bf16.mxu1 %v2608_v39  ;;  %v2082_v39 = vld [vmem:[%s3058_s13 + $0x30] sm:$0xff]   ;;  %1801 = vmatprep.subr.bf16.mxu0 %v2081_v38 }
 0x185   :  { %1003 = vmatmul.mubr.bf16.gmra.mrb[20].mxu1 %v2697_v22  ;;  %1802 = vmatpush3.bf16.msra.mxu0 %v2082_v39 }
 0x186   :  { %1012 = vmatprep.mubr.bf16.mxu1 %v2207_v34  ;;  %1917 = vmatpush1.bf16.msra.mxu1 %v2613_v40  ;;  %v2084_v40 = vld [vmem:[%s3058_s13 + $0x38] sm:$0xff]  }
 0x187   :  { %1910 = vmatprep.subr.bf16.mxu1 %v2619_v41 }
 0x188   :  { %1260 = vmatmul.mubr.bf16.gmra.mrb[52].mxu0 %v1078_v3 }
 0x18a   :  { %1918 = vmatpush1.bf16.msra.mxu1 %v2625_v42 }
 0x18b   :  { %1911 = vmatprep.subr.bf16.mxu1 %v2632_v43 }
 0x18d   :  { %1013 = vmatmul.mubr.bf16.gmra.mrb[24].mxu1 %v2734_v15 }
 0x18e   :  { %1022 = vmatprep.mubr.bf16.mxu1 %v2207_v34  ;;  %1919 = vmatpush1.bf16.msra.mxu1 %v2637_v44 }
 0x18f   :  { %1912 = vmatprep.subr.bf16.mxu1 %v2643_v45 }
 0x192   :  { %1920 = vmatpush1.bf16.msra.mxu1 %v2649_v46 }
 0x193   :  { %1913 = vmatprep.subr.bf16.mxu1 %v2656_v47 }
 0x195   :  { %1023 = vmatmul.mubr.bf16.gmra.mrb[28].mxu1 %v2724_v10 }
 0x196   :  { %1032 = vmatprep.mubr.bf16.mxu1 %v2207_v34  ;;  %1921 = vmatpush1.bf16.msra.mxu1 %v2661_v48 }
 0x197   :  { %1914 = vmatprep.subr.bf16.mxu1 %v2667_v49  ;;  %v1324_v49 = vlaneseq }
 0x199   :  { %v1325_v15 = vshrl.u32 %v1324_v49, 7 }
 0x19a   :  { %1922 = vmatpush1.bf16.msra.mxu1 %v2673_v50 }
 0x19d   :  { %1033 = vmatmul.mubr.bf16.gmra.mrb[32].mxu1 %v2763_v6 }
 0x19e   :  { %1042 = vmatprep.mubr.bf16.mxu1 %v2207_v34 }
 0x1a5   :  { %1043 = vmatmul.mubr.bf16.gmra.mrb[36].mxu1 %v2756_v1  ;;  %v1326_v1 = vsub.s32 0, %v1325_v15 }
 0x1a6   :  { %1052 = vmatprep.mubr.bf16.mxu1 %v2207_v34 }
 0x1a7   :  { %v2913_v20 = vrot.slane %v1322_v21, %v1326_v1 }
 0x1ad   :  { %1053 = vmatmul.mubr.bf16.gmra.mrb[40].mxu1 %v2789_v33 }
 0x1ae   :  { %1062 = vmatprep.mubr.bf16.mxu1 %v2207_v34 }
 0x1b5   :  { %1063 = vmatmul.mubr.bf16.gmra.mrb[44].mxu1 %v2784_v30  ;;  %v1330_v30 = vsub.s32 1, %v1325_v15 }
 0x1b6   :  { %1269 = vmatprep.mubr.bf16.mxu1 %v2207_v34 }
 0x1b7   :  { %v2915_v23 = vrot.slane %v1322_v21, %v1330_v30 }
 0x1bd   :  { %1270 = vmatmul.mubr.bf16.vlgmr.msra.gmra.mrb[40].mxu1 %v1079_v18 }
 0x1be   :  { %1279 = vmatprep.mubr.bf16.mxu1 %v2207_v34  ;;  %v2083_v34 = vld [vmem:[%s3058_s13 + $0x78] sm:$0xff]  }
 0x1bf   :  { %1803 = vmatprep.subr.bf16.mxu0 %v2083_v34 }
 0x1c0   :  { %1804 = vmatpush3.bf16.msra.mxu0 %v2084_v40 }
 0x1c5   :  { %1280 = vmatmul.mubr.bf16.gmra.mrb[44].mxu1 %v1080_v17 }
 0x233   :  { %v1211_v41 = vpop.f32.mrb[32].mxu0 }
 0x234   :  { %v1213_v42 = vpop.f32.mrb[33].mxu0 }
 0x235   :  { %v1215_v43 = vpop.f32.mrb[34].mxu0 }
 0x236   :  { %v1217_v44 = vpop.f32.mrb[35].mxu0 }
 0x23b   :  { %v1221_v45 = vpop.f32.mrb[36].mxu0 }
 0x23c   :  { %v1223_v46 = vpop.f32.mrb[37].mxu0 }
 0x23d   :  { %v1225_v47 = vpop.f32.mrb[38].mxu0 }
 0x23e   :  { %v1227_v48 = vpop.f32.mrb[39].mxu0 }
 0x243   :  { %v1231_v50 = vpop.f32.mrb[40].mxu0 }
 0x244   :  { %v1233_v22 = vpop.f32.mrb[41].mxu0 }
 0x245   :  { %v2901_v27 = vpop.f32.mrb[42].mxu0 }
 0x246   :  { %v2903_v10 = vpop.f32.mrb[43].mxu0 }
 0x24b   :  { %v2905_v6 = vpop.f32.mrb[44].mxu0 }
 0x24c   :  { %v2907_v32 = vpop.f32.mrb[45].mxu0 }
 0x24d   :  { %v2909_v33 = vpop.f32.mrb[46].mxu0 }
 0x24e   :  { %v2911_v19 = vpop.f32.mrb[47].mxu0 }
 0x250   :  { %v994_v51 = vpop.f32.mrb[16].mxu1 }
 0x251   :  { %v1923_v24 = vadd.f32 %v1211_v41, %v994_v51  ;;  %v996_v26 = vpop.f32.mrb[17].mxu1 }
 0x252   :  { %v1924_v28 = vadd.f32 %v1213_v42, %v996_v26  ;;  %v998_v29 = vpop.f32.mrb[18].mxu1 }
 0x253   :  { %v1334_v55 = vadd.f32 %v1923_v24, %v2913_v20  ;;  %v1925_v52 = vadd.f32 %v1215_v43, %v998_v29  ;;  %v1000_v31 = vpop.f32.mrb[19].mxu1  ;;  %v2918_v54 = vpop.f32.mrb[48].mxu0 }
 0x254   :  { %v1335_v56 = vadd.f32 %v1924_v28, %v2915_v23  ;;  %v1926_v60 = vadd.f32 %v1217_v44, %v1000_v31  ;;  %v2921_v57 = vpop.f32.mrb[49].mxu0 }
 0x255   :  { %v1336_v58 = vadd.f32 %v1925_v52, %v2913_v20  ;;  %v2924_v59 = vpop.f32.mrb[50].mxu0  ;;  %v1366_v63 = vmax.f32 %v1334_v55, 0.0 }
 0x256   :  { %v1337_v61 = vadd.f32 %v1926_v60, %v2915_v23  ;;  %v2927_v62 = vpop.f32.mrb[51].mxu0  ;;  %v1367_v3 = vmax.f32 %v1335_v56, 0.0 }
 0x257   :  { %v1368_v2 = vmax.f32 %v1336_v58, 0.0 }
 0x258   :  { %v1369_v4 = vmax.f32 %v1337_v61, 0.0  ;;  %v1004_v5 = vpop.f32.mrb[20].mxu1 }
 0x259   :  { %v1398_v7 = vpack.c.bf16 %v1368_v2, %v1366_v63  ;;  %v1927_v0 = vadd.f32 %v1221_v45, %v1004_v5  ;;  %v1006_v8 = vpop.f32.mrb[21].mxu1 }
 0x25a   :  { %v1928_v11 = vadd.f32 %v1223_v46, %v1006_v8  ;;  %v1008_v12 = vpop.f32.mrb[22].mxu1  ;;  %v1399_v25 = vpack.c.bf16 %v1369_v4, %v1367_v3 }
 0x25b   :  { %v1338_v35 = vadd.f32 %v1927_v0, %v2913_v20  ;;  %v1929_v53 = vadd.f32 %v1225_v47, %v1008_v12  ;;  %v1010_v13 = vpop.f32.mrb[23].mxu1  ;;  %v2930_v14 = vpop.f32.mrb[52].mxu0 }
 0x25c   :  { %v1339_v9 = vadd.f32 %v1928_v11, %v2915_v23  ;;  %v1930_v16 = vadd.f32 %v1227_v48, %v1010_v13  ;;  %1581 = vmatprep.mubr.bf16.mxu0 %v1399_v25  ;;  %v2933_v17 = vpop.f32.mrb[53].mxu0 }
 0x25d   :  { %v1340_v18 = vadd.f32 %v1929_v53, %v2913_v20  ;;  %1582 = vmatmul.mubr.bf16.vlgmr.msra.gmra.mrb[56].mxu0 %v1398_v7  ;;  %v2936_v36 = vpop.f32.mrb[54].mxu0  ;;  %v1370_v39 = vmax.f32 %v1338_v35, 0.0 }
 0x25e   :  { %v1341_v37 = vadd.f32 %v1930_v16, %v2915_v23  ;;  %v2939_v38 = vpop.f32.mrb[55].mxu0  ;;  %v1371_v40 = vmax.f32 %v1339_v9, 0.0 }
 0x25f   :  { %v1372_v34 = vmax.f32 %v1340_v18, 0.0 }
 0x260   :  { %v1373_v41 = vmax.f32 %v1341_v37, 0.0  ;;  %v1014_v42 = vpop.f32.mrb[24].mxu1 }
 0x261   :  { %v1931_v43 = vadd.f32 %v1231_v50, %v1014_v42  ;;  %v1016_v44 = vpop.f32.mrb[25].mxu1  ;;  %v1400_v45 = vpack.c.bf16 %v1372_v34, %v1370_v39 }
 0x262   :  { %v1932_v46 = vadd.f32 %v1233_v22, %v1016_v44  ;;  %v1018_v47 = vpop.f32.mrb[26].mxu1  ;;  %v1401_v48 = vpack.c.bf16 %v1373_v41, %v1371_v40 }
 0x263   :  { %v1342_v49 = vadd.f32 %v1931_v43, %v2913_v20  ;;  %v1933_v15 = vadd.f32 %v2901_v27, %v1018_v47  ;;  %v1020_v1 = vpop.f32.mrb[27].mxu1 }
 0x264   :  { %v1343_v21 = vadd.f32 %v1932_v46, %v2915_v23  ;;  %v1934_v30 = vadd.f32 %v2903_v10, %v1020_v1  ;;  %1589 = vmatprep.mubr.bf16.mxu0 %v1401_v48 }
 0x265   :  { %v1344_v51 = vadd.f32 %v1933_v15, %v2913_v20  ;;  %1590 = vmatmul.mubr.bf16.gmra.mrb[60].mxu0 %v1400_v45  ;;  %v1374_v24 = vmax.f32 %v1342_v49, 0.0 }
 0x266   :  { %v1345_v50 = vadd.f32 %v1934_v30, %v2915_v23  ;;  %v1375_v22 = vmax.f32 %v1343_v21, 0.0 }
 0x267   :  { %v1376_v26 = vmax.f32 %v1344_v51, 0.0 }
 0x268   :  { %v1377_v28 = vmax.f32 %v1345_v50, 0.0  ;;  %v1024_v29 = vpop.f32.mrb[28].mxu1 }
 0x269   :  { %v1935_v55 = vadd.f32 %v2905_v6, %v1024_v29  ;;  %v1026_v52 = vpop.f32.mrb[29].mxu1  ;;  %v1402_v27 = vpack.c.bf16 %v1376_v26, %v1374_v24 }
 0x26a   :  { %v1936_v31 = vadd.f32 %v2907_v32, %v1026_v52  ;;  %v1028_v56 = vpop.f32.mrb[30].mxu1  ;;  %v1403_v60 = vpack.c.bf16 %v1377_v28, %v1375_v22 }
 0x26b   :  { %v1346_v10 = vadd.f32 %v1935_v55, %v2913_v20  ;;  %v1937_v58 = vadd.f32 %v2909_v33, %v1028_v56  ;;  %v1030_v61 = vpop.f32.mrb[31].mxu1 }
 0x26c   :  { %v1347_v63 = vadd.f32 %v1936_v31, %v2915_v23  ;;  %v1938_v2 = vadd.f32 %v2911_v19, %v1030_v61  ;;  %1597 = vmatprep.mubr.bf16.mxu0 %v1403_v60 }
 0x26d   :  { %v1348_v3 = vadd.f32 %v1937_v58, %v2913_v20  ;;  %1598 = vmatmul.mubr.bf16.gmra.mrb[64].mxu0 %v1402_v27  ;;  %v1378_v4 = vmax.f32 %v1346_v10, 0.0 }
 0x26e   :  { %v1349_v6 = vadd.f32 %v1938_v2, %v2915_v23  ;;  %v1379_v32 = vmax.f32 %v1347_v63, 0.0 }
 0x26f   :  { %v1380_v5 = vmax.f32 %v1348_v3, 0.0 }
 0x270   :  { %v1381_v7 = vmax.f32 %v1349_v6, 0.0  ;;  %v1034_v0 = vpop.f32.mrb[32].mxu1 }
 0x271   :  { %v1939_v8 = vadd.f32 %v2918_v54, %v1034_v0  ;;  %v1036_v11 = vpop.f32.mrb[33].mxu1  ;;  %v1404_v33 = vpack.c.bf16 %v1380_v5, %v1378_v4 }
 0x272   :  { %v1940_v12 = vadd.f32 %v2921_v57, %v1036_v11  ;;  %v1038_v25 = vpop.f32.mrb[34].mxu1  ;;  %v1405_v35 = vpack.c.bf16 %v1381_v7, %v1379_v32 }
 0x273   :  { %v1350_v19 = vadd.f32 %v1939_v8, %v2913_v20  ;;  %v1941_v53 = vadd.f32 %v2924_v59, %v1038_v25  ;;  %v1040_v13 = vpop.f32.mrb[35].mxu1  ;;  %v2979_v25 = vld [vmem:[#allocation9] ss:$0 sm:$0xff] }
 0x274   :  { %v1351_v9 = vadd.f32 %v1940_v12, %v2915_v23  ;;  %v1942_v16 = vadd.f32 %v2927_v62, %v1040_v13  ;;  %1605 = vmatprep.mubr.bf16.mxu0 %v1405_v35 }
 0x275   :  { %v1352_v18 = vadd.f32 %v1941_v53, %v2913_v20  ;;  %1606 = vmatmul.mubr.bf16.gmra.mrb[68].mxu0 %v1404_v33  ;;  %v1382_v37 = vmax.f32 %v1350_v19, 0.0 }
 0x276   :  { %v1353_v54 = vadd.f32 %v1942_v16, %v2915_v23  ;;  %v1383_v57 = vmax.f32 %v1351_v9, 0.0 }
 0x277   :  { %v1384_v39 = vmax.f32 %v1352_v18, 0.0 }
 0x278   :  { %v1385_v34 = vmax.f32 %v1353_v54, 0.0  ;;  %v1044_v40 = vpop.f32.mrb[36].mxu1 }
 0x279   :  { %v1943_v41 = vadd.f32 %v2930_v14, %v1044_v40  ;;  %v1046_v42 = vpop.f32.mrb[37].mxu1  ;;  %v1406_v59 = vpack.c.bf16 %v1384_v39, %v1382_v37 }
 0x27a   :  { %v1944_v43 = vadd.f32 %v2933_v17, %v1046_v42  ;;  %v1048_v44 = vpop.f32.mrb[38].mxu1  ;;  %v1407_v45 = vpack.c.bf16 %v1385_v34, %v1383_v57 }
 0x27b   :  { %v1354_v62 = vadd.f32 %v1943_v41, %v2913_v20  ;;  %v1945_v46 = vadd.f32 %v2936_v36, %v1048_v44  ;;  %v1050_v47 = vpop.f32.mrb[39].mxu1 }
 0x27c   :  { %v1355_v48 = vadd.f32 %v1944_v43, %v2915_v23  ;;  %v1946_v49 = vadd.f32 %v2939_v38, %v1050_v47  ;;  %1613 = vmatprep.mubr.bf16.mxu0 %v1407_v45 }
 0x27d   :  { %v1356_v15 = vadd.f32 %v1945_v46, %v2913_v20  ;;  %1614 = vmatmul.mubr.bf16.gmra.mrb[72].mxu0 %v1406_v59  ;;  %v1386_v1 = vmax.f32 %v1354_v62, 0.0 }
 0x27e   :  { %v1357_v14 = vadd.f32 %v1946_v49, %v2915_v23  ;;  %v1387_v17 = vmax.f32 %v1355_v48, 0.0 }
 0x27f   :  { %v1388_v21 = vmax.f32 %v1356_v15, 0.0 }
 0x280   :  { %v1389_v30 = vmax.f32 %v1357_v14, 0.0 }
 0x281   :  { %v1408_v51 = vpack.c.bf16 %v1388_v21, %v1386_v1 }
 0x282   :  { %v1409_v50 = vpack.c.bf16 %v1389_v30, %v1387_v17 }
 0x284   :  { %1621 = vmatprep.mubr.bf16.mxu0 %v1409_v50 }
 0x285   :  { %1622 = vmatmul.mubr.bf16.gmra.mrb[76].mxu0 %v1408_v51 }
 0x290   :  { %v1271_v36 = vpop.f32.mrb[40].mxu1 }
 0x291   :  { %v1358_v24 = vadd.f32 %v2913_v20, %v1271_v36  ;;  %v1273_v26 = vpop.f32.mrb[41].mxu1 }
 0x292   :  { %v1359_v38 = vadd.f32 %v2915_v23, %v1273_v26  ;;  %v1275_v22 = vpop.f32.mrb[42].mxu1 }
 0x293   :  { %v1360_v28 = vadd.f32 %v2913_v20, %v1275_v22  ;;  %v1277_v29 = vpop.f32.mrb[43].mxu1  ;;  %v1390_v52 = vmax.f32 %v1358_v24, 0.0 }
 0x294   :  { %v1361_v55 = vadd.f32 %v2915_v23, %v1277_v29  ;;  %v1391_v31 = vmax.f32 %v1359_v38, 0.0 }
 0x295   :  { %v1392_v27 = vmax.f32 %v1360_v28, 0.0 }
 0x296   :  { %v1393_v56 = vmax.f32 %v1361_v55, 0.0 }
 0x297   :  { %v1410_v60 = vpack.c.bf16 %v1392_v27, %v1390_v52 }
 0x298   :  { %v1411_v10 = vpack.c.bf16 %v1393_v56, %v1391_v31  ;;  %v1281_v58 = vpop.f32.mrb[44].mxu1 }
 0x299   :  { %v1362_v61 = vadd.f32 %v2913_v20, %v1281_v58  ;;  %v1283_v63 = vpop.f32.mrb[45].mxu1 }
 0x29a   :  { %v1363_v2 = vadd.f32 %v2915_v23, %v1283_v63  ;;  %v1285_v3 = vpop.f32.mrb[46].mxu1  ;;  %1629 = vmatprep.mubr.bf16.mxu0 %v1411_v10 }
 0x29b   :  { %v1364_v6 = vadd.f32 %v2913_v20, %v1285_v3  ;;  %v1287_v4 = vpop.f32.mrb[47].mxu1  ;;  %1630 = vmatmul.mubr.bf16.gmra.mrb[80].mxu0 %v1410_v60  ;;  %v1394_v32 = vmax.f32 %v1362_v61, 0.0 }
 0x29c   :  { %v1365_v5 = vadd.f32 %v2915_v23, %v1287_v4  ;;  %v1395_v0 = vmax.f32 %v1363_v2, 0.0 }
 0x29d   :  { %v1396_v7 = vmax.f32 %v1364_v6, 0.0 }
 0x29e   :  { %v1397_v8 = vmax.f32 %v1365_v5, 0.0 }
 0x29f   :  { %v1412_v11 = vpack.c.bf16 %v1396_v7, %v1394_v32 }
 0x2a0   :  { %v1413_v33 = vpack.c.bf16 %v1397_v8, %v1395_v0 }
 0x2a2   :  { %1637 = vmatprep.mubr.bf16.mxu0 %v1413_v33 }
 0x2a3   :  { %1638 = vmatmul.mubr.bf16.gmra.mrb[84].mxu0 %v1412_v11 }
 0x330   :  { %v1805_v12 = vpop.f32.mrb[56].mxu0 }
 0x331   :  { %v1806_v35 = vpop.f32.mrb[57].mxu0 }
 0x332   :  { %v1807_v19 = vadd.f32 %v1806_v35, %v1805_v12  ;;  %v1808_v53 = vpop.f32.mrb[58].mxu0 }
 0x333   :  { %v1809_v13 = vpop.f32.mrb[59].mxu0 }
 0x334   :  { %v1584_v20 = vadd.f32 %v1807_v19, %v2979_v25  ;;  %v1810_v9 = vadd.f32 %v1809_v13, %v1808_v53 }
 0x336   :  { %1646 = vst [vmem:[%s3060_s15] sm:$0xff] %v1584_v20  ;;  %v1587_v23 = vadd.f32 %v1810_v9, %v2979_v25 }
 0x338   :  { %1647 = vst [vmem:[%s3060_s15 + $0x8] sm:$0xff] %v1587_v23  ;;  %v1811_v16 = vpop.f32.mrb[60].mxu0 }
 0x339   :  { %v1812_v18 = vpop.f32.mrb[61].mxu0 }
 0x33a   :  { %v1813_v54 = vadd.f32 %v1812_v18, %v1811_v16  ;;  %v1814_v37 = vpop.f32.mrb[62].mxu0 }
 0x33b   :  { %v1815_v39 = vpop.f32.mrb[63].mxu0 }
 0x33c   :  { %v1592_v57 = vadd.f32 %v1813_v54, %v2979_v25  ;;  %v1816_v34 = vadd.f32 %v1815_v39, %v1814_v37 }
 0x33e   :  { %1648 = vst [vmem:[%s3060_s15 + $0x10] sm:$0xff] %v1592_v57  ;;  %v1595_v40 = vadd.f32 %v1816_v34, %v2979_v25 }
 0x340   :  { %1649 = vst [vmem:[%s3060_s15 + $0x18] sm:$0xff] %v1595_v40  ;;  %v1817_v41 = vpop.f32.mrb[64].mxu0 }
 0x341   :  { %v1818_v42 = vpop.f32.mrb[65].mxu0 }
 0x342   :  { %v1819_v59 = vadd.f32 %v1818_v42, %v1817_v41  ;;  %v1820_v43 = vpop.f32.mrb[66].mxu0 }
 0x343   :  { %v1821_v44 = vpop.f32.mrb[67].mxu0 }
 0x344   :  { %v1600_v45 = vadd.f32 %v1819_v59, %v2979_v25  ;;  %v1822_v62 = vadd.f32 %v1821_v44, %v1820_v43 }
 0x346   :  { %1650 = vst [vmem:[%s3060_s15 + $0x20] sm:$0xff] %v1600_v45  ;;  %v1603_v46 = vadd.f32 %v1822_v62, %v2979_v25 }
 0x348   :  { %1651 = vst [vmem:[%s3060_s15 + $0x28] sm:$0xff] %v1603_v46  ;;  %v1823_v47 = vpop.f32.mrb[68].mxu0 }
 0x349   :  { %v1824_v48 = vpop.f32.mrb[69].mxu0 }
 0x34a   :  { %v1825_v49 = vadd.f32 %v1824_v48, %v1823_v47  ;;  %v1826_v15 = vpop.f32.mrb[70].mxu0 }
 0x34b   :  { %v1827_v14 = vpop.f32.mrb[71].mxu0 }
 0x34c   :  { %v1608_v1 = vadd.f32 %v1825_v49, %v2979_v25  ;;  %v1828_v21 = vadd.f32 %v1827_v14, %v1826_v15 }
 0x34e   :  { %1652 = vst [vmem:[%s3060_s15 + $0x30] sm:$0xff] %v1608_v1  ;;  %v1611_v17 = vadd.f32 %v1828_v21, %v2979_v25 }
 0x350   :  { %1653 = vst [vmem:[%s3060_s15 + $0x38] sm:$0xff] %v1611_v17  ;;  %v1829_v30 = vpop.f32.mrb[72].mxu0 }
 0x351   :  { %v1830_v51 = vpop.f32.mrb[73].mxu0 }
 0x352   :  { %v1831_v50 = vadd.f32 %v1830_v51, %v1829_v30  ;;  %v1832_v36 = vpop.f32.mrb[74].mxu0 }
 0x353   :  { %v1833_v24 = vpop.f32.mrb[75].mxu0 }
 0x354   :  { %v1616_v26 = vadd.f32 %v1831_v50, %v2979_v25  ;;  %v1834_v38 = vadd.f32 %v1833_v24, %v1832_v36 }
 0x356   :  { %1654 = vst [vmem:[%s3060_s15 + $0x40] sm:$0xff] %v1616_v26  ;;  %v1619_v22 = vadd.f32 %v1834_v38, %v2979_v25 }
 0x358   :  { %1655 = vst [vmem:[%s3060_s15 + $0x48] sm:$0xff] %v1619_v22  ;;  %v1835_v28 = vpop.f32.mrb[76].mxu0 }
 0x359   :  { %v1836_v29 = vpop.f32.mrb[77].mxu0 }
 0x35a   :  { %v1837_v55 = vadd.f32 %v1836_v29, %v1835_v28  ;;  %v1838_v52 = vpop.f32.mrb[78].mxu0 }
 0x35b   :  { %v1839_v27 = vpop.f32.mrb[79].mxu0 }
 0x35c   :  { %v1624_v31 = vadd.f32 %v1837_v55, %v2979_v25  ;;  %v1840_v56 = vadd.f32 %v1839_v27, %v1838_v52 }
 0x35e   :  { %1656 = vst [vmem:[%s3060_s15 + $0x50] sm:$0xff] %v1624_v31  ;;  %v1627_v60 = vadd.f32 %v1840_v56, %v2979_v25 }
 0x360   :  { %1657 = vst [vmem:[%s3060_s15 + $0x58] sm:$0xff] %v1627_v60 }
 0x36e   :  { %v1841_v10 = vpop.f32.mrb[80].mxu0 }
 0x36f   :  { %v1842_v58 = vpop.f32.mrb[81].mxu0 }
 0x370   :  { %v1843_v61 = vadd.f32 %v1842_v58, %v1841_v10  ;;  %v1844_v63 = vpop.f32.mrb[82].mxu0 }
 0x371   :  { %v1845_v2 = vpop.f32.mrb[83].mxu0 }
 0x372   :  { %v1632_v3 = vadd.f32 %v1843_v61, %v2979_v25  ;;  %v1846_v6 = vadd.f32 %v1845_v2, %v1844_v63 }
 0x374   :  { %1658 = vst [vmem:[%s3060_s15 + $0x60] sm:$0xff] %v1632_v3  ;;  %v1635_v4 = vadd.f32 %v1846_v6, %v2979_v25 }
 0x376   :  { %1659 = vst [vmem:[%s3060_s15 + $0x68] sm:$0xff] %v1635_v4  ;;  %v1847_v5 = vpop.f32.mrb[84].mxu0 }
 0x377   :  { %v1848_v32 = vpop.f32.mrb[85].mxu0 }
 0x378   :  { %v1849_v7 = vadd.f32 %v1848_v32, %v1847_v5  ;;  %v1850_v0 = vpop.f32.mrb[86].mxu0 }
 0x379   :  { %v1851_v8 = vpop.f32.mrb[87].mxu0 }
 0x37a   :  { %v1640_v11 = vadd.f32 %v1849_v7, %v2979_v25  ;;  %v1852_v33 = vadd.f32 %v1851_v8, %v1850_v0 }
 0x37c   :  { %1660 = vst [vmem:[%s3060_s15 + $0x70] sm:$0xff] %v1640_v11  ;;  %v1643_v12 = vadd.f32 %v1852_v33, %v2979_v25 }
 0x37e   :  { %1661 = vst [vmem:[%s3060_s15 + $0x78] sm:$0xff] %v1643_v12 }
 0x37f   :  { %1666 = vsyncpa [#allocation3], 1 }
 0x380   :  { %1667 = vsyncpa [#allocation5], 1 }
 0x381   :  { %1668 = vsyncpa [#allocation8], 1 }

</bundles_post_ra>
